<compile_context>
chip_gen: v5e
topology: v5e:2x2
jax: 0.10.0
libtpu: 0.0.40
codegen_flags: <defaults>
</compile_context>

<pallas_src>
import functools

import jax
import jax.numpy as jnp
import numpy as np
from jax.experimental import pallas as pl
from jax.experimental.pallas import tpu as pltpu


# --------------------------- fused LSTM + head kernel ---------------------------

def _fused_lstm_head_kernel(*refs, T, B, H, num_layers):
    """refs = (x_ref,
               wih_0, whh_0, b_0, ..., wih_{L-1}, whh_{L-1}, b_{L-1},
               w_head, b_head,
               out_ref,
               seq_scr)

    x_ref:    (T*B, I)   time-major flattened input sequence
    wih_l:    (I_l, 4H)  W_ih^T   (gate order along 4H axis: i, f, g, o)
    whh_l:    (H, 4H)    W_hh^T
    b_l:      (1, 4H)    b_ih + b_hh
    w_head:   (H, 2)     [fc_w^T | fc_log_var_w^T]
    b_head:   (1, 2)
    out_ref:  (B, 2)     col 0 = mean, col 1 = log_var
    seq_scr:  (T*B, H)   VMEM scratch holding the current layer's hidden sequence
    """
    x_ref = refs[0]
    layer_refs = [refs[1 + 3 * l: 1 + 3 * l + 3] for l in range(num_layers)]
    w_head_ref = refs[1 + 3 * num_layers]
    b_head_ref = refs[2 + 3 * num_layers]
    out_ref = refs[3 + 3 * num_layers]
    seq_scr = refs[4 + 3 * num_layers]

    h = None
    for layer, (wih_ref, whh_ref, b_ref) in enumerate(layer_refs):
        is_last_layer = layer == num_layers - 1

        # Layer input: original x for layer 0, previous layer's hidden sequence after.
        # (The full load happens before any store of this layer's outputs below.)
        seq_in = x_ref[...] if layer == 0 else seq_scr[...]

        # Whole-sequence input projection: one MXU matmul instead of T tiny ones.
        gates_pre = (jnp.dot(seq_in, wih_ref[...],
                             preferred_element_type=jnp.float32)
                     + b_ref[...])                                  # (T*B, 4H)

        whh = whh_ref[...]                                          # (H, 4H), resident
        h = jnp.zeros((B, H), jnp.float32)
        c = jnp.zeros((B, H), jnp.float32)

        # Statically unrolled recurrence (T is small and static).
        for t in range(T):
            g = gates_pre[t * B:(t + 1) * B, :] + jnp.dot(
                h, whh, preferred_element_type=jnp.float32)         # (B, 4H)
            i = jax.nn.sigmoid(g[:, 0:H])
            f = jax.nn.sigmoid(g[:, H:2 * H])
            gg = jnp.tanh(g[:, 2 * H:3 * H])
            o = jax.nn.sigmoid(g[:, 3 * H:4 * H])
            c = f * c + i * gg
            h = o * jnp.tanh(c)
            if not is_last_layer:
                seq_scr[t * B:(t + 1) * B, :] = h                   # stays in VMEM

    # Fused heads: [mean | log_var] in one tiny matmul; only HBM write of the kernel.
    out_ref[...] = (jnp.dot(h, w_head_ref[...],
                            preferred_element_type=jnp.float32)
                    + b_head_ref[...])


def lstm_forward(x, params):
    """x: (B, T, I) float32. Returns (mean, log_var), each (B,)."""
    B, T, I = x.shape
    L = len(params["layers"])
    H = params["layers"][0][1].shape[1]            # w_hh: (4H, H)

    # time-major, flattened: row t*B + b  <->  (time t, batch b)
    x_flat = jnp.transpose(x, (1, 0, 2)).reshape(T * B, I).astype(jnp.float32)

    ins = [x_flat]
    for (w_ih, w_hh, b_ih, b_hh) in params["layers"]:
        ins.append(jnp.transpose(w_ih).astype(jnp.float32))                # (I_l, 4H)
        ins.append(jnp.transpose(w_hh).astype(jnp.float32))                # (H, 4H)
        ins.append((b_ih + b_hh).reshape(1, -1).astype(jnp.float32))       # (1, 4H)
    w_head = jnp.concatenate(
        [jnp.transpose(params["fc_w"]), jnp.transpose(params["fc_lv_w"])],
        axis=1).astype(jnp.float32)                                        # (H, 2)
    b_head = jnp.concatenate(
        [params["fc_b"], params["fc_lv_b"]]).reshape(1, 2).astype(jnp.float32)
    ins += [w_head, b_head]

    kernel = functools.partial(_fused_lstm_head_kernel,
                               T=T, B=B, H=H, num_layers=L)
    out = pl.pallas_call(
        kernel,
        out_shape=jax.ShapeDtypeStruct((B, 2), jnp.float32),
        scratch_shapes=[pltpu.VMEM((T * B, H), jnp.float32)],   # inter-layer hidden seq
    )(*ins)
    return out[:, 0], out[:, 1]


# ------------------------------ parameter setup ------------------------------

def init_params(key, input_size, hidden_size, num_layers):
    """Deterministic init mimicking PyTorch's uniform(-1/sqrt(H), 1/sqrt(H))."""
    k = 1.0 / np.sqrt(hidden_size)
    params = {"layers": []}
    for layer in range(num_layers):
        in_sz = input_size if layer == 0 else hidden_size
        key, k1, k2, k3, k4 = jax.random.split(key, 5)
        w_ih = jax.random.uniform(k1, (4 * hidden_size, in_sz), jnp.float32, -k, k)
        w_hh = jax.random.uniform(k2, (4 * hidden_size, hidden_size), jnp.float32, -k, k)
        b_ih = jax.random.uniform(k3, (4 * hidden_size,), jnp.float32, -k, k)
        b_hh = jax.random.uniform(k4, (4 * hidden_size,), jnp.float32, -k, k)
        params["layers"].append((w_ih, w_hh, b_ih, b_hh))
    kf = 1.0 / np.sqrt(hidden_size)
    key, k1, k2, k3, k4 = jax.random.split(key, 5)
    params["fc_w"] = jax.random.uniform(k1, (1, hidden_size), jnp.float32, -kf, kf)
    params["fc_b"] = jax.random.uniform(k2, (1,), jnp.float32, -kf, kf)
    params["fc_lv_w"] = jax.random.uniform(k3, (1, hidden_size), jnp.float32, -kf, kf)
    params["fc_lv_b"] = jax.random.uniform(k4, (1,), jnp.float32, -kf, kf)
    return params


# ------------------------- pure-JAX reference (check) ------------------------

def ref_forward(x, params):
    h_seq = x.astype(jnp.float32)                     # (B, T, I)
    for (w_ih, w_hh, b_ih, b_hh) in params["layers"]:
        B = h_seq.shape[0]
        H = w_hh.shape[1]

        def step(carry, x_t):
            h, c = carry
            gates = x_t @ w_ih.T + b_ih + h @ w_hh.T + b_hh
            i = jax.nn.sigmoid(gates[:, 0:H])
            f = jax.nn.sigmoid(gates[:, H:2 * H])
            g = jnp.tanh(gates[:, 2 * H:3 * H])
            o = jax.nn.sigmoid(gates[:, 3 * H:4 * H])
            c = f * c + i * g
            h = o * jnp.tanh(c)
            return (h, c), h

        init = (jnp.zeros((B, H), jnp.float32), jnp.zeros((B, H), jnp.float32))
        (_, _), outs = jax.lax.scan(step, init, jnp.transpose(h_seq, (1, 0, 2)))
        h_seq = jnp.transpose(outs, (1, 0, 2))        # (B, T, H)
    last_hidden = h_seq[:, -1, :]
    mean = last_hidden @ params["fc_w"].T + params["fc_b"]
    log_var = last_hidden @ params["fc_lv_w"].T + params["fc_lv_b"]
    return mean[:, 0], log_var[:, 0]


# ---------------------------------- main --------------------------------------

if __name__ == "__main__":
    batch, seq, input_size, hidden_size, num_layers = 2, 8, 16, 32, 2

    key = jax.random.PRNGKey(0)
    key, xkey, pkey = jax.random.split(key, 3)
    x = jax.random.normal(xkey, (batch, seq, input_size), dtype=jnp.float32)
    params = init_params(pkey, input_size, hidden_size, num_layers)

    mean, log_var = jax.jit(lstm_forward)(x, params)
    jax.block_until_ready((mean, log_var))

    mean_ref, log_var_ref = ref_forward(x, params)
    np.testing.assert_allclose(np.asarray(mean), np.asarray(mean_ref), rtol=1e-2, atol=1e-2)
    np.testing.assert_allclose(np.asarray(log_var), np.asarray(log_var_ref), rtol=1e-2, atol=1e-2)

    assert mean.shape == (batch,) and log_var.shape == (batch,)
    print("KERNEL_OK")
</pallas_src>

<mosaic_0001>
module attributes {stable_mosaic.version = 11 : i64} {
  func.func @_fused_lstm_head_kernel(%arg0: memref<16x16xf32, #tpu.memory_space<vmem>>, %arg1: memref<16x128xf32, #tpu.memory_space<vmem>>, %arg2: memref<32x128xf32, #tpu.memory_space<vmem>>, %arg3: memref<1x128xf32, #tpu.memory_space<vmem>>, %arg4: memref<32x128xf32, #tpu.memory_space<vmem>>, %arg5: memref<32x128xf32, #tpu.memory_space<vmem>>, %arg6: memref<1x128xf32, #tpu.memory_space<vmem>>, %arg7: memref<32x2xf32, #tpu.memory_space<vmem>>, %arg8: memref<1x2xf32, #tpu.memory_space<vmem>>, %arg9: memref<2x2xf32, #tpu.memory_space<vmem>>, %arg10: memref<16x32xf32, #tpu.memory_space<vmem>>) attributes {dimension_semantics = [], scalar_prefetch = 0 : i64, scratch_operands = 1 : i64, tpu.core_type = #tpu.core_type<tc>} {
    %c0 = arith.constant 0 : index
    %c0_0 = arith.constant 0 : index
    %0 = vector.load %arg0[%c0, %c0_0] : memref<16x16xf32, #tpu.memory_space<vmem>>, vector<16x16xf32>
    %c0_1 = arith.constant 0 : index
    %c0_2 = arith.constant 0 : index
    %1 = vector.load %arg1[%c0_1, %c0_2] : memref<16x128xf32, #tpu.memory_space<vmem>>, vector<16x128xf32>
    %cst = arith.constant dense<0.000000e+00> : vector<16x128xf32>
    %2 = tpu.matmul %0, %1, %cst {dimension_numbers = #tpu.dot_dimension_numbers<[1], [0], [0], [1], [0, 0, 1, 1], [], []>} : vector<16x16xf32>, vector<16x128xf32>, vector<16x128xf32> -> vector<16x128xf32>
    %c0_3 = arith.constant 0 : index
    %c0_4 = arith.constant 0 : index
    %3 = vector.load %arg3[%c0_3, %c0_4] : memref<1x128xf32, #tpu.memory_space<vmem>>, vector<1x128xf32>
    %4 = vector.broadcast %3 : vector<1x128xf32> to vector<16x128xf32>
    %5 = arith.addf %2, %4 : vector<16x128xf32>
    %c0_5 = arith.constant 0 : index
    %c0_6 = arith.constant 0 : index
    %6 = vector.load %arg2[%c0_5, %c0_6] : memref<32x128xf32, #tpu.memory_space<vmem>>, vector<32x128xf32>
    %cst_7 = arith.constant 0.000000e+00 : f32
    %7 = vector.broadcast %cst_7 : f32 to vector<2x32xf32>
    %cst_8 = arith.constant 0.000000e+00 : f32
    %8 = vector.broadcast %cst_8 : f32 to vector<2x32xf32>
    %9 = vector.extract_strided_slice %5 {offsets = [0, 0], sizes = [2, 128], strides = [1, 1]} : vector<16x128xf32> to vector<2x128xf32>
    %cst_9 = arith.constant dense<0.000000e+00> : vector<2x128xf32>
    %10 = tpu.matmul %7, %6, %cst_9 {dimension_numbers = #tpu.dot_dimension_numbers<[1], [0], [0], [1], [0, 0, 1, 1], [], []>} : vector<2x32xf32>, vector<32x128xf32>, vector<2x128xf32> -> vector<2x128xf32>
    %11 = arith.addf %9, %10 : vector<2x128xf32>
    %12 = vector.extract_strided_slice %11 {offsets = [0, 0], sizes = [2, 32], strides = [1, 1]} : vector<2x128xf32> to vector<2x32xf32>
    %13 = arith.negf %12 : vector<2x32xf32>
    %14 = math.exp %13 : vector<2x32xf32>
    %cst_10 = arith.constant 1.000000e+00 : f32
    %15 = vector.broadcast %cst_10 : f32 to vector<2x32xf32>
    %16 = arith.addf %15, %14 : vector<2x32xf32>
    %17 = arith.divf %15, %16 : vector<2x32xf32>
    %18 = vector.extract_strided_slice %11 {offsets = [0, 32], sizes = [2, 32], strides = [1, 1]} : vector<2x128xf32> to vector<2x32xf32>
    %19 = arith.negf %18 : vector<2x32xf32>
    %20 = math.exp %19 : vector<2x32xf32>
    %cst_11 = arith.constant 1.000000e+00 : f32
    %21 = vector.broadcast %cst_11 : f32 to vector<2x32xf32>
    %22 = arith.addf %21, %20 : vector<2x32xf32>
    %23 = arith.divf %21, %22 : vector<2x32xf32>
    %24 = vector.extract_strided_slice %11 {offsets = [0, 64], sizes = [2, 32], strides = [1, 1]} : vector<2x128xf32> to vector<2x32xf32>
    %25 = math.tanh %24 : vector<2x32xf32>
    %26 = vector.extract_strided_slice %11 {offsets = [0, 96], sizes = [2, 32], strides = [1, 1]} : vector<2x128xf32> to vector<2x32xf32>
    %27 = arith.negf %26 : vector<2x32xf32>
    %28 = math.exp %27 : vector<2x32xf32>
    %cst_12 = arith.constant 1.000000e+00 : f32
    %29 = vector.broadcast %cst_12 : f32 to vector<2x32xf32>
    %30 = arith.addf %29, %28 : vector<2x32xf32>
    %31 = arith.divf %29, %30 : vector<2x32xf32>
    %32 = arith.mulf %23, %8 : vector<2x32xf32>
    %33 = arith.mulf %17, %25 : vector<2x32xf32>
    %34 = arith.addf %32, %33 : vector<2x32xf32>
    %35 = math.tanh %34 : vector<2x32xf32>
    %36 = arith.mulf %31, %35 : vector<2x32xf32>
    %c0_13 = arith.constant 0 : index
    %c0_14 = arith.constant 0 : index
    %37 = vector.load %arg10[%c0_13, %c0_14] : memref<16x32xf32, #tpu.memory_space<vmem>>, vector<2x32xf32>
    tpu.vector_store %arg10[%c0_13, %c0_14], %36 {strides = array<i32>} : memref<16x32xf32, #tpu.memory_space<vmem>>, vector<2x32xf32>,
    %38 = vector.extract_strided_slice %5 {offsets = [2, 0], sizes = [2, 128], strides = [1, 1]} : vector<16x128xf32> to vector<2x128xf32>
    %cst_15 = arith.constant dense<0.000000e+00> : vector<2x128xf32>
    %39 = tpu.matmul %36, %6, %cst_15 {dimension_numbers = #tpu.dot_dimension_numbers<[1], [0], [0], [1], [0, 0, 1, 1], [], []>} : vector<2x32xf32>, vector<32x128xf32>, vector<2x128xf32> -> vector<2x128xf32>
    %40 = arith.addf %38, %39 : vector<2x128xf32>
    %41 = vector.extract_strided_slice %40 {offsets = [0, 0], sizes = [2, 32], strides = [1, 1]} : vector<2x128xf32> to vector<2x32xf32>
    %42 = arith.negf %41 : vector<2x32xf32>
    %43 = math.exp %42 : vector<2x32xf32>
    %cst_16 = arith.constant 1.000000e+00 : f32
    %44 = vector.broadcast %cst_16 : f32 to vector<2x32xf32>
    %45 = arith.addf %44, %43 : vector<2x32xf32>
    %46 = arith.divf %44, %45 : vector<2x32xf32>
    %47 = vector.extract_strided_slice %40 {offsets = [0, 32], sizes = [2, 32], strides = [1, 1]} : vector<2x128xf32> to vector<2x32xf32>
    %48 = arith.negf %47 : vector<2x32xf32>
    %49 = math.exp %48 : vector<2x32xf32>
    %cst_17 = arith.constant 1.000000e+00 : f32
    %50 = vector.broadcast %cst_17 : f32 to vector<2x32xf32>
    %51 = arith.addf %50, %49 : vector<2x32xf32>
    %52 = arith.divf %50, %51 : vector<2x32xf32>
    %53 = vector.extract_strided_slice %40 {offsets = [0, 64], sizes = [2, 32], strides = [1, 1]} : vector<2x128xf32> to vector<2x32xf32>
    %54 = math.tanh %53 : vector<2x32xf32>
    %55 = vector.extract_strided_slice %40 {offsets = [0, 96], sizes = [2, 32], strides = [1, 1]} : vector<2x128xf32> to vector<2x32xf32>
    %56 = arith.negf %55 : vector<2x32xf32>
    %57 = math.exp %56 : vector<2x32xf32>
    %cst_18 = arith.constant 1.000000e+00 : f32
    %58 = vector.broadcast %cst_18 : f32 to vector<2x32xf32>
    %59 = arith.addf %58, %57 : vector<2x32xf32>
    %60 = arith.divf %58, %59 : vector<2x32xf32>
    %61 = arith.mulf %52, %34 : vector<2x32xf32>
    %62 = arith.mulf %46, %54 : vector<2x32xf32>
    %63 = arith.addf %61, %62 : vector<2x32xf32>
    %64 = math.tanh %63 : vector<2x32xf32>
    %65 = arith.mulf %60, %64 : vector<2x32xf32>
    %c2 = arith.constant 2 : index
    %c0_19 = arith.constant 0 : index
    %66 = vector.load %arg10[%c2, %c0_19] : memref<16x32xf32, #tpu.memory_space<vmem>>, vector<2x32xf32>
    tpu.vector_store %arg10[%c2, %c0_19], %65 {strides = array<i32>} : memref<16x32xf32, #tpu.memory_space<vmem>>, vector<2x32xf32>,
    %67 = vector.extract_strided_slice %5 {offsets = [4, 0], sizes = [2, 128], strides = [1, 1]} : vector<16x128xf32> to vector<2x128xf32>
    %cst_20 = arith.constant dense<0.000000e+00> : vector<2x128xf32>
    %68 = tpu.matmul %65, %6, %cst_20 {dimension_numbers = #tpu.dot_dimension_numbers<[1], [0], [0], [1], [0, 0, 1, 1], [], []>} : vector<2x32xf32>, vector<32x128xf32>, vector<2x128xf32> -> vector<2x128xf32>
    %69 = arith.addf %67, %68 : vector<2x128xf32>
    %70 = vector.extract_strided_slice %69 {offsets = [0, 0], sizes = [2, 32], strides = [1, 1]} : vector<2x128xf32> to vector<2x32xf32>
    %71 = arith.negf %70 : vector<2x32xf32>
    %72 = math.exp %71 : vector<2x32xf32>
    %cst_21 = arith.constant 1.000000e+00 : f32
    %73 = vector.broadcast %cst_21 : f32 to vector<2x32xf32>
    %74 = arith.addf %73, %72 : vector<2x32xf32>
    %75 = arith.divf %73, %74 : vector<2x32xf32>
    %76 = vector.extract_strided_slice %69 {offsets = [0, 32], sizes = [2, 32], strides = [1, 1]} : vector<2x128xf32> to vector<2x32xf32>
    %77 = arith.negf %76 : vector<2x32xf32>
    %78 = math.exp %77 : vector<2x32xf32>
    %cst_22 = arith.constant 1.000000e+00 : f32
    %79 = vector.broadcast %cst_22 : f32 to vector<2x32xf32>
    %80 = arith.addf %79, %78 : vector<2x32xf32>
    %81 = arith.divf %79, %80 : vector<2x32xf32>
    %82 = vector.extract_strided_slice %69 {offsets = [0, 64], sizes = [2, 32], strides = [1, 1]} : vector<2x128xf32> to vector<2x32xf32>
    %83 = math.tanh %82 : vector<2x32xf32>
    %84 = vector.extract_strided_slice %69 {offsets = [0, 96], sizes = [2, 32], strides = [1, 1]} : vector<2x128xf32> to vector<2x32xf32>
    %85 = arith.negf %84 : vector<2x32xf32>
    %86 = math.exp %85 : vector<2x32xf32>
    %cst_23 = arith.constant 1.000000e+00 : f32
    %87 = vector.broadcast %cst_23 : f32 to vector<2x32xf32>
    %88 = arith.addf %87, %86 : vector<2x32xf32>
    %89 = arith.divf %87, %88 : vector<2x32xf32>
    %90 = arith.mulf %81, %63 : vector<2x32xf32>
    %91 = arith.mulf %75, %83 : vector<2x32xf32>
    %92 = arith.addf %90, %91 : vector<2x32xf32>
    %93 = math.tanh %92 : vector<2x32xf32>
    %94 = arith.mulf %89, %93 : vector<2x32xf32>
    %c4 = arith.constant 4 : index
    %c0_24 = arith.constant 0 : index
    %95 = vector.load %arg10[%c4, %c0_24] : memref<16x32xf32, #tpu.memory_space<vmem>>, vector<2x32xf32>
    tpu.vector_store %arg10[%c4, %c0_24], %94 {strides = array<i32>} : memref<16x32xf32, #tpu.memory_space<vmem>>, vector<2x32xf32>,
    %96 = vector.extract_strided_slice %5 {offsets = [6, 0], sizes = [2, 128], strides = [1, 1]} : vector<16x128xf32> to vector<2x128xf32>
    %cst_25 = arith.constant dense<0.000000e+00> : vector<2x128xf32>
    %97 = tpu.matmul %94, %6, %cst_25 {dimension_numbers = #tpu.dot_dimension_numbers<[1], [0], [0], [1], [0, 0, 1, 1], [], []>} : vector<2x32xf32>, vector<32x128xf32>, vector<2x128xf32> -> vector<2x128xf32>
    %98 = arith.addf %96, %97 : vector<2x128xf32>
    %99 = vector.extract_strided_slice %98 {offsets = [0, 0], sizes = [2, 32], strides = [1, 1]} : vector<2x128xf32> to vector<2x32xf32>
    %100 = arith.negf %99 : vector<2x32xf32>
    %101 = math.exp %100 : vector<2x32xf32>
    %cst_26 = arith.constant 1.000000e+00 : f32
    %102 = vector.broadcast %cst_26 : f32 to vector<2x32xf32>
    %103 = arith.addf %102, %101 : vector<2x32xf32>
    %104 = arith.divf %102, %103 : vector<2x32xf32>
    %105 = vector.extract_strided_slice %98 {offsets = [0, 32], sizes = [2, 32], strides = [1, 1]} : vector<2x128xf32> to vector<2x32xf32>
    %106 = arith.negf %105 : vector<2x32xf32>
    %107 = math.exp %106 : vector<2x32xf32>
    %cst_27 = arith.constant 1.000000e+00 : f32
    %108 = vector.broadcast %cst_27 : f32 to vector<2x32xf32>
    %109 = arith.addf %108, %107 : vector<2x32xf32>
    %110 = arith.divf %108, %109 : vector<2x32xf32>
    %111 = vector.extract_strided_slice %98 {offsets = [0, 64], sizes = [2, 32], strides = [1, 1]} : vector<2x128xf32> to vector<2x32xf32>
    %112 = math.tanh %111 : vector<2x32xf32>
    %113 = vector.extract_strided_slice %98 {offsets = [0, 96], sizes = [2, 32], strides = [1, 1]} : vector<2x128xf32> to vector<2x32xf32>
    %114 = arith.negf %113 : vector<2x32xf32>
    %115 = math.exp %114 : vector<2x32xf32>
    %cst_28 = arith.constant 1.000000e+00 : f32
    %116 = vector.broadcast %cst_28 : f32 to vector<2x32xf32>
    %117 = arith.addf %116, %115 : vector<2x32xf32>
    %118 = arith.divf %116, %117 : vector<2x32xf32>
    %119 = arith.mulf %110, %92 : vector<2x32xf32>
    %120 = arith.mulf %104, %112 : vector<2x32xf32>
    %121 = arith.addf %119, %120 : vector<2x32xf32>
    %122 = math.tanh %121 : vector<2x32xf32>
    %123 = arith.mulf %118, %122 : vector<2x32xf32>
    %c6 = arith.constant 6 : index
    %c0_29 = arith.constant 0 : index
    %124 = vector.load %arg10[%c6, %c0_29] : memref<16x32xf32, #tpu.memory_space<vmem>>, vector<2x32xf32>
    tpu.vector_store %arg10[%c6, %c0_29], %123 {strides = array<i32>} : memref<16x32xf32, #tpu.memory_space<vmem>>, vector<2x32xf32>,
    %125 = vector.extract_strided_slice %5 {offsets = [8, 0], sizes = [2, 128], strides = [1, 1]} : vector<16x128xf32> to vector<2x128xf32>
    %cst_30 = arith.constant dense<0.000000e+00> : vector<2x128xf32>
    %126 = tpu.matmul %123, %6, %cst_30 {dimension_numbers = #tpu.dot_dimension_numbers<[1], [0], [0], [1], [0, 0, 1, 1], [], []>} : vector<2x32xf32>, vector<32x128xf32>, vector<2x128xf32> -> vector<2x128xf32>
    %127 = arith.addf %125, %126 : vector<2x128xf32>
    %128 = vector.extract_strided_slice %127 {offsets = [0, 0], sizes = [2, 32], strides = [1, 1]} : vector<2x128xf32> to vector<2x32xf32>
    %129 = arith.negf %128 : vector<2x32xf32>
    %130 = math.exp %129 : vector<2x32xf32>
    %cst_31 = arith.constant 1.000000e+00 : f32
    %131 = vector.broadcast %cst_31 : f32 to vector<2x32xf32>
    %132 = arith.addf %131, %130 : vector<2x32xf32>
    %133 = arith.divf %131, %132 : vector<2x32xf32>
    %134 = vector.extract_strided_slice %127 {offsets = [0, 32], sizes = [2, 32], strides = [1, 1]} : vector<2x128xf32> to vector<2x32xf32>
    %135 = arith.negf %134 : vector<2x32xf32>
    %136 = math.exp %135 : vector<2x32xf32>
    %cst_32 = arith.constant 1.000000e+00 : f32
    %137 = vector.broadcast %cst_32 : f32 to vector<2x32xf32>
    %138 = arith.addf %137, %136 : vector<2x32xf32>
    %139 = arith.divf %137, %138 : vector<2x32xf32>
    %140 = vector.extract_strided_slice %127 {offsets = [0, 64], sizes = [2, 32], strides = [1, 1]} : vector<2x128xf32> to vector<2x32xf32>
    %141 = math.tanh %140 : vector<2x32xf32>
    %142 = vector.extract_strided_slice %127 {offsets = [0, 96], sizes = [2, 32], strides = [1, 1]} : vector<2x128xf32> to vector<2x32xf32>
    %143 = arith.negf %142 : vector<2x32xf32>
    %144 = math.exp %143 : vector<2x32xf32>
    %cst_33 = arith.constant 1.000000e+00 : f32
    %145 = vector.broadcast %cst_33 : f32 to vector<2x32xf32>
    %146 = arith.addf %145, %144 : vector<2x32xf32>
    %147 = arith.divf %145, %146 : vector<2x32xf32>
    %148 = arith.mulf %139, %121 : vector<2x32xf32>
    %149 = arith.mulf %133, %141 : vector<2x32xf32>
    %150 = arith.addf %148, %149 : vector<2x32xf32>
    %151 = math.tanh %150 : vector<2x32xf32>
    %152 = arith.mulf %147, %151 : vector<2x32xf32>
    %c8 = arith.constant 8 : index
    %c0_34 = arith.constant 0 : index
    %153 = vector.load %arg10[%c8, %c0_34] : memref<16x32xf32, #tpu.memory_space<vmem>>, vector<2x32xf32>
    tpu.vector_store %arg10[%c8, %c0_34], %152 {strides = array<i32>} : memref<16x32xf32, #tpu.memory_space<vmem>>, vector<2x32xf32>,
    %154 = vector.extract_strided_slice %5 {offsets = [10, 0], sizes = [2, 128], strides = [1, 1]} : vector<16x128xf32> to vector<2x128xf32>
    %cst_35 = arith.constant dense<0.000000e+00> : vector<2x128xf32>
    %155 = tpu.matmul %152, %6, %cst_35 {dimension_numbers = #tpu.dot_dimension_numbers<[1], [0], [0], [1], [0, 0, 1, 1], [], []>} : vector<2x32xf32>, vector<32x128xf32>, vector<2x128xf32> -> vector<2x128xf32>
    %156 = arith.addf %154, %155 : vector<2x128xf32>
    %157 = vector.extract_strided_slice %156 {offsets = [0, 0], sizes = [2, 32], strides = [1, 1]} : vector<2x128xf32> to vector<2x32xf32>
    %158 = arith.negf %157 : vector<2x32xf32>
    %159 = math.exp %158 : vector<2x32xf32>
    %cst_36 = arith.constant 1.000000e+00 : f32
    %160 = vector.broadcast %cst_36 : f32 to vector<2x32xf32>
    %161 = arith.addf %160, %159 : vector<2x32xf32>
    %162 = arith.divf %160, %161 : vector<2x32xf32>
    %163 = vector.extract_strided_slice %156 {offsets = [0, 32], sizes = [2, 32], strides = [1, 1]} : vector<2x128xf32> to vector<2x32xf32>
    %164 = arith.negf %163 : vector<2x32xf32>
    %165 = math.exp %164 : vector<2x32xf32>
    %cst_37 = arith.constant 1.000000e+00 : f32
    %166 = vector.broadcast %cst_37 : f32 to vector<2x32xf32>
    %167 = arith.addf %166, %165 : vector<2x32xf32>
    %168 = arith.divf %166, %167 : vector<2x32xf32>
    %169 = vector.extract_strided_slice %156 {offsets = [0, 64], sizes = [2, 32], strides = [1, 1]} : vector<2x128xf32> to vector<2x32xf32>
    %170 = math.tanh %169 : vector<2x32xf32>
    %171 = vector.extract_strided_slice %156 {offsets = [0, 96], sizes = [2, 32], strides = [1, 1]} : vector<2x128xf32> to vector<2x32xf32>
    %172 = arith.negf %171 : vector<2x32xf32>
    %173 = math.exp %172 : vector<2x32xf32>
    %cst_38 = arith.constant 1.000000e+00 : f32
    %174 = vector.broadcast %cst_38 : f32 to vector<2x32xf32>
    %175 = arith.addf %174, %173 : vector<2x32xf32>
    %176 = arith.divf %174, %175 : vector<2x32xf32>
    %177 = arith.mulf %168, %150 : vector<2x32xf32>
    %178 = arith.mulf %162, %170 : vector<2x32xf32>
    %179 = arith.addf %177, %178 : vector<2x32xf32>
    %180 = math.tanh %179 : vector<2x32xf32>
    %181 = arith.mulf %176, %180 : vector<2x32xf32>
    %c10 = arith.constant 10 : index
    %c0_39 = arith.constant 0 : index
    %182 = vector.load %arg10[%c10, %c0_39] : memref<16x32xf32, #tpu.memory_space<vmem>>, vector<2x32xf32>
    tpu.vector_store %arg10[%c10, %c0_39], %181 {strides = array<i32>} : memref<16x32xf32, #tpu.memory_space<vmem>>, vector<2x32xf32>,
    %183 = vector.extract_strided_slice %5 {offsets = [12, 0], sizes = [2, 128], strides = [1, 1]} : vector<16x128xf32> to vector<2x128xf32>
    %cst_40 = arith.constant dense<0.000000e+00> : vector<2x128xf32>
    %184 = tpu.matmul %181, %6, %cst_40 {dimension_numbers = #tpu.dot_dimension_numbers<[1], [0], [0], [1], [0, 0, 1, 1], [], []>} : vector<2x32xf32>, vector<32x128xf32>, vector<2x128xf32> -> vector<2x128xf32>
    %185 = arith.addf %183, %184 : vector<2x128xf32>
    %186 = vector.extract_strided_slice %185 {offsets = [0, 0], sizes = [2, 32], strides = [1, 1]} : vector<2x128xf32> to vector<2x32xf32>
    %187 = arith.negf %186 : vector<2x32xf32>
    %188 = math.exp %187 : vector<2x32xf32>
    %cst_41 = arith.constant 1.000000e+00 : f32
    %189 = vector.broadcast %cst_41 : f32 to vector<2x32xf32>
    %190 = arith.addf %189, %188 : vector<2x32xf32>
    %191 = arith.divf %189, %190 : vector<2x32xf32>
    %192 = vector.extract_strided_slice %185 {offsets = [0, 32], sizes = [2, 32], strides = [1, 1]} : vector<2x128xf32> to vector<2x32xf32>
    %193 = arith.negf %192 : vector<2x32xf32>
    %194 = math.exp %193 : vector<2x32xf32>
    %cst_42 = arith.constant 1.000000e+00 : f32
    %195 = vector.broadcast %cst_42 : f32 to vector<2x32xf32>
    %196 = arith.addf %195, %194 : vector<2x32xf32>
    %197 = arith.divf %195, %196 : vector<2x32xf32>
    %198 = vector.extract_strided_slice %185 {offsets = [0, 64], sizes = [2, 32], strides = [1, 1]} : vector<2x128xf32> to vector<2x32xf32>
    %199 = math.tanh %198 : vector<2x32xf32>
    %200 = vector.extract_strided_slice %185 {offsets = [0, 96], sizes = [2, 32], strides = [1, 1]} : vector<2x128xf32> to vector<2x32xf32>
    %201 = arith.negf %200 : vector<2x32xf32>
    %202 = math.exp %201 : vector<2x32xf32>
    %cst_43 = arith.constant 1.000000e+00 : f32
    %203 = vector.broadcast %cst_43 : f32 to vector<2x32xf32>
    %204 = arith.addf %203, %202 : vector<2x32xf32>
    %205 = arith.divf %203, %204 : vector<2x32xf32>
    %206 = arith.mulf %197, %179 : vector<2x32xf32>
    %207 = arith.mulf %191, %199 : vector<2x32xf32>
    %208 = arith.addf %206, %207 : vector<2x32xf32>
    %209 = math.tanh %208 : vector<2x32xf32>
    %210 = arith.mulf %205, %209 : vector<2x32xf32>
    %c12 = arith.constant 12 : index
    %c0_44 = arith.constant 0 : index
    %211 = vector.load %arg10[%c12, %c0_44] : memref<16x32xf32, #tpu.memory_space<vmem>>, vector<2x32xf32>
    tpu.vector_store %arg10[%c12, %c0_44], %210 {strides = array<i32>} : memref<16x32xf32, #tpu.memory_space<vmem>>, vector<2x32xf32>,
    %212 = vector.extract_strided_slice %5 {offsets = [14, 0], sizes = [2, 128], strides = [1, 1]} : vector<16x128xf32> to vector<2x128xf32>
    %cst_45 = arith.constant dense<0.000000e+00> : vector<2x128xf32>
    %213 = tpu.matmul %210, %6, %cst_45 {dimension_numbers = #tpu.dot_dimension_numbers<[1], [0], [0], [1], [0, 0, 1, 1], [], []>} : vector<2x32xf32>, vector<32x128xf32>, vector<2x128xf32> -> vector<2x128xf32>
    %214 = arith.addf %212, %213 : vector<2x128xf32>
    %215 = vector.extract_strided_slice %214 {offsets = [0, 0], sizes = [2, 32], strides = [1, 1]} : vector<2x128xf32> to vector<2x32xf32>
    %216 = arith.negf %215 : vector<2x32xf32>
    %217 = math.exp %216 : vector<2x32xf32>
    %cst_46 = arith.constant 1.000000e+00 : f32
    %218 = vector.broadcast %cst_46 : f32 to vector<2x32xf32>
    %219 = arith.addf %218, %217 : vector<2x32xf32>
    %220 = arith.divf %218, %219 : vector<2x32xf32>
    %221 = vector.extract_strided_slice %214 {offsets = [0, 32], sizes = [2, 32], strides = [1, 1]} : vector<2x128xf32> to vector<2x32xf32>
    %222 = arith.negf %221 : vector<2x32xf32>
    %223 = math.exp %222 : vector<2x32xf32>
    %cst_47 = arith.constant 1.000000e+00 : f32
    %224 = vector.broadcast %cst_47 : f32 to vector<2x32xf32>
    %225 = arith.addf %224, %223 : vector<2x32xf32>
    %226 = arith.divf %224, %225 : vector<2x32xf32>
    %227 = vector.extract_strided_slice %214 {offsets = [0, 64], sizes = [2, 32], strides = [1, 1]} : vector<2x128xf32> to vector<2x32xf32>
    %228 = math.tanh %227 : vector<2x32xf32>
    %229 = vector.extract_strided_slice %214 {offsets = [0, 96], sizes = [2, 32], strides = [1, 1]} : vector<2x128xf32> to vector<2x32xf32>
    %230 = arith.negf %229 : vector<2x32xf32>
    %231 = math.exp %230 : vector<2x32xf32>
    %cst_48 = arith.constant 1.000000e+00 : f32
    %232 = vector.broadcast %cst_48 : f32 to vector<2x32xf32>
    %233 = arith.addf %232, %231 : vector<2x32xf32>
    %234 = arith.divf %232, %233 : vector<2x32xf32>
    %235 = arith.mulf %226, %208 : vector<2x32xf32>
    %236 = arith.mulf %220, %228 : vector<2x32xf32>
    %237 = arith.addf %235, %236 : vector<2x32xf32>
    %238 = math.tanh %237 : vector<2x32xf32>
    %239 = arith.mulf %234, %238 : vector<2x32xf32>
    %c14 = arith.constant 14 : index
    %c0_49 = arith.constant 0 : index
    %240 = vector.load %arg10[%c14, %c0_49] : memref<16x32xf32, #tpu.memory_space<vmem>>, vector<2x32xf32>
    tpu.vector_store %arg10[%c14, %c0_49], %239 {strides = array<i32>} : memref<16x32xf32, #tpu.memory_space<vmem>>, vector<2x32xf32>,
    %c0_50 = arith.constant 0 : index
    %c0_51 = arith.constant 0 : index
    %241 = vector.load %arg10[%c0_50, %c0_51] : memref<16x32xf32, #tpu.memory_space<vmem>>, vector<16x32xf32>
    %c0_52 = arith.constant 0 : index
    %c0_53 = arith.constant 0 : index
    %242 = vector.load %arg4[%c0_52, %c0_53] : memref<32x128xf32, #tpu.memory_space<vmem>>, vector<32x128xf32>
    %cst_54 = arith.constant dense<0.000000e+00> : vector<16x128xf32>
    %243 = tpu.matmul %241, %242, %cst_54 {dimension_numbers = #tpu.dot_dimension_numbers<[1], [0], [0], [1], [0, 0, 1, 1], [], []>} : vector<16x32xf32>, vector<32x128xf32>, vector<16x128xf32> -> vector<16x128xf32>
    %c0_55 = arith.constant 0 : index
    %c0_56 = arith.constant 0 : index
    %244 = vector.load %arg6[%c0_55, %c0_56] : memref<1x128xf32, #tpu.memory_space<vmem>>, vector<1x128xf32>
    %245 = vector.broadcast %244 : vector<1x128xf32> to vector<16x128xf32>
    %246 = arith.addf %243, %245 : vector<16x128xf32>
    %c0_57 = arith.constant 0 : index
    %c0_58 = arith.constant 0 : index
    %247 = vector.load %arg5[%c0_57, %c0_58] : memref<32x128xf32, #tpu.memory_space<vmem>>, vector<32x128xf32>
    %cst_59 = arith.constant 0.000000e+00 : f32
    %248 = vector.broadcast %cst_59 : f32 to vector<2x32xf32>
    %cst_60 = arith.constant 0.000000e+00 : f32
    %249 = vector.broadcast %cst_60 : f32 to vector<2x32xf32>
    %250 = vector.extract_strided_slice %246 {offsets = [0, 0], sizes = [2, 128], strides = [1, 1]} : vector<16x128xf32> to vector<2x128xf32>
    %cst_61 = arith.constant dense<0.000000e+00> : vector<2x128xf32>
    %251 = tpu.matmul %248, %247, %cst_61 {dimension_numbers = #tpu.dot_dimension_numbers<[1], [0], [0], [1], [0, 0, 1, 1], [], []>} : vector<2x32xf32>, vector<32x128xf32>, vector<2x128xf32> -> vector<2x128xf32>
    %252 = arith.addf %250, %251 : vector<2x128xf32>
    %253 = vector.extract_strided_slice %252 {offsets = [0, 0], sizes = [2, 32], strides = [1, 1]} : vector<2x128xf32> to vector<2x32xf32>
    %254 = arith.negf %253 : vector<2x32xf32>
    %255 = math.exp %254 : vector<2x32xf32>
    %cst_62 = arith.constant 1.000000e+00 : f32
    %256 = vector.broadcast %cst_62 : f32 to vector<2x32xf32>
    %257 = arith.addf %256, %255 : vector<2x32xf32>
    %258 = arith.divf %256, %257 : vector<2x32xf32>
    %259 = vector.extract_strided_slice %252 {offsets = [0, 32], sizes = [2, 32], strides = [1, 1]} : vector<2x128xf32> to vector<2x32xf32>
    %260 = arith.negf %259 : vector<2x32xf32>
    %261 = math.exp %260 : vector<2x32xf32>
    %cst_63 = arith.constant 1.000000e+00 : f32
    %262 = vector.broadcast %cst_63 : f32 to vector<2x32xf32>
    %263 = arith.addf %262, %261 : vector<2x32xf32>
    %264 = arith.divf %262, %263 : vector<2x32xf32>
    %265 = vector.extract_strided_slice %252 {offsets = [0, 64], sizes = [2, 32], strides = [1, 1]} : vector<2x128xf32> to vector<2x32xf32>
    %266 = math.tanh %265 : vector<2x32xf32>
    %267 = vector.extract_strided_slice %252 {offsets = [0, 96], sizes = [2, 32], strides = [1, 1]} : vector<2x128xf32> to vector<2x32xf32>
    %268 = arith.negf %267 : vector<2x32xf32>
    %269 = math.exp %268 : vector<2x32xf32>
    %cst_64 = arith.constant 1.000000e+00 : f32
    %270 = vector.broadcast %cst_64 : f32 to vector<2x32xf32>
    %271 = arith.addf %270, %269 : vector<2x32xf32>
    %272 = arith.divf %270, %271 : vector<2x32xf32>
    %273 = arith.mulf %264, %249 : vector<2x32xf32>
    %274 = arith.mulf %258, %266 : vector<2x32xf32>
    %275 = arith.addf %273, %274 : vector<2x32xf32>
    %276 = math.tanh %275 : vector<2x32xf32>
    %277 = arith.mulf %272, %276 : vector<2x32xf32>
    %278 = vector.extract_strided_slice %246 {offsets = [2, 0], sizes = [2, 128], strides = [1, 1]} : vector<16x128xf32> to vector<2x128xf32>
    %cst_65 = arith.constant dense<0.000000e+00> : vector<2x128xf32>
    %279 = tpu.matmul %277, %247, %cst_65 {dimension_numbers = #tpu.dot_dimension_numbers<[1], [0], [0], [1], [0, 0, 1, 1], [], []>} : vector<2x32xf32>, vector<32x128xf32>, vector<2x128xf32> -> vector<2x128xf32>
    %280 = arith.addf %278, %279 : vector<2x128xf32>
    %281 = vector.extract_strided_slice %280 {offsets = [0, 0], sizes = [2, 32], strides = [1, 1]} : vector<2x128xf32> to vector<2x32xf32>
    %282 = arith.negf %281 : vector<2x32xf32>
    %283 = math.exp %282 : vector<2x32xf32>
    %cst_66 = arith.constant 1.000000e+00 : f32
    %284 = vector.broadcast %cst_66 : f32 to vector<2x32xf32>
    %285 = arith.addf %284, %283 : vector<2x32xf32>
    %286 = arith.divf %284, %285 : vector<2x32xf32>
    %287 = vector.extract_strided_slice %280 {offsets = [0, 32], sizes = [2, 32], strides = [1, 1]} : vector<2x128xf32> to vector<2x32xf32>
    %288 = arith.negf %287 : vector<2x32xf32>
    %289 = math.exp %288 : vector<2x32xf32>
    %cst_67 = arith.constant 1.000000e+00 : f32
    %290 = vector.broadcast %cst_67 : f32 to vector<2x32xf32>
    %291 = arith.addf %290, %289 : vector<2x32xf32>
    %292 = arith.divf %290, %291 : vector<2x32xf32>
    %293 = vector.extract_strided_slice %280 {offsets = [0, 64], sizes = [2, 32], strides = [1, 1]} : vector<2x128xf32> to vector<2x32xf32>
    %294 = math.tanh %293 : vector<2x32xf32>
    %295 = vector.extract_strided_slice %280 {offsets = [0, 96], sizes = [2, 32], strides = [1, 1]} : vector<2x128xf32> to vector<2x32xf32>
    %296 = arith.negf %295 : vector<2x32xf32>
    %297 = math.exp %296 : vector<2x32xf32>
    %cst_68 = arith.constant 1.000000e+00 : f32
    %298 = vector.broadcast %cst_68 : f32 to vector<2x32xf32>
    %299 = arith.addf %298, %297 : vector<2x32xf32>
    %300 = arith.divf %298, %299 : vector<2x32xf32>
    %301 = arith.mulf %292, %275 : vector<2x32xf32>
    %302 = arith.mulf %286, %294 : vector<2x32xf32>
    %303 = arith.addf %301, %302 : vector<2x32xf32>
    %304 = math.tanh %303 : vector<2x32xf32>
    %305 = arith.mulf %300, %304 : vector<2x32xf32>
    %306 = vector.extract_strided_slice %246 {offsets = [4, 0], sizes = [2, 128], strides = [1, 1]} : vector<16x128xf32> to vector<2x128xf32>
    %cst_69 = arith.constant dense<0.000000e+00> : vector<2x128xf32>
    %307 = tpu.matmul %305, %247, %cst_69 {dimension_numbers = #tpu.dot_dimension_numbers<[1], [0], [0], [1], [0, 0, 1, 1], [], []>} : vector<2x32xf32>, vector<32x128xf32>, vector<2x128xf32> -> vector<2x128xf32>
    %308 = arith.addf %306, %307 : vector<2x128xf32>
    %309 = vector.extract_strided_slice %308 {offsets = [0, 0], sizes = [2, 32], strides = [1, 1]} : vector<2x128xf32> to vector<2x32xf32>
    %310 = arith.negf %309 : vector<2x32xf32>
    %311 = math.exp %310 : vector<2x32xf32>
    %cst_70 = arith.constant 1.000000e+00 : f32
    %312 = vector.broadcast %cst_70 : f32 to vector<2x32xf32>
    %313 = arith.addf %312, %311 : vector<2x32xf32>
    %314 = arith.divf %312, %313 : vector<2x32xf32>
    %315 = vector.extract_strided_slice %308 {offsets = [0, 32], sizes = [2, 32], strides = [1, 1]} : vector<2x128xf32> to vector<2x32xf32>
    %316 = arith.negf %315 : vector<2x32xf32>
    %317 = math.exp %316 : vector<2x32xf32>
    %cst_71 = arith.constant 1.000000e+00 : f32
    %318 = vector.broadcast %cst_71 : f32 to vector<2x32xf32>
    %319 = arith.addf %318, %317 : vector<2x32xf32>
    %320 = arith.divf %318, %319 : vector<2x32xf32>
    %321 = vector.extract_strided_slice %308 {offsets = [0, 64], sizes = [2, 32], strides = [1, 1]} : vector<2x128xf32> to vector<2x32xf32>
    %322 = math.tanh %321 : vector<2x32xf32>
    %323 = vector.extract_strided_slice %308 {offsets = [0, 96], sizes = [2, 32], strides = [1, 1]} : vector<2x128xf32> to vector<2x32xf32>
    %324 = arith.negf %323 : vector<2x32xf32>
    %325 = math.exp %324 : vector<2x32xf32>
    %cst_72 = arith.constant 1.000000e+00 : f32
    %326 = vector.broadcast %cst_72 : f32 to vector<2x32xf32>
    %327 = arith.addf %326, %325 : vector<2x32xf32>
    %328 = arith.divf %326, %327 : vector<2x32xf32>
    %329 = arith.mulf %320, %303 : vector<2x32xf32>
    %330 = arith.mulf %314, %322 : vector<2x32xf32>
    %331 = arith.addf %329, %330 : vector<2x32xf32>
    %332 = math.tanh %331 : vector<2x32xf32>
    %333 = arith.mulf %328, %332 : vector<2x32xf32>
    %334 = vector.extract_strided_slice %246 {offsets = [6, 0], sizes = [2, 128], strides = [1, 1]} : vector<16x128xf32> to vector<2x128xf32>
    %cst_73 = arith.constant dense<0.000000e+00> : vector<2x128xf32>
    %335 = tpu.matmul %333, %247, %cst_73 {dimension_numbers = #tpu.dot_dimension_numbers<[1], [0], [0], [1], [0, 0, 1, 1], [], []>} : vector<2x32xf32>, vector<32x128xf32>, vector<2x128xf32> -> vector<2x128xf32>
    %336 = arith.addf %334, %335 : vector<2x128xf32>
    %337 = vector.extract_strided_slice %336 {offsets = [0, 0], sizes = [2, 32], strides = [1, 1]} : vector<2x128xf32> to vector<2x32xf32>
    %338 = arith.negf %337 : vector<2x32xf32>
    %339 = math.exp %338 : vector<2x32xf32>
    %cst_74 = arith.constant 1.000000e+00 : f32
    %340 = vector.broadcast %cst_74 : f32 to vector<2x32xf32>
    %341 = arith.addf %340, %339 : vector<2x32xf32>
    %342 = arith.divf %340, %341 : vector<2x32xf32>
    %343 = vector.extract_strided_slice %336 {offsets = [0, 32], sizes = [2, 32], strides = [1, 1]} : vector<2x128xf32> to vector<2x32xf32>
    %344 = arith.negf %343 : vector<2x32xf32>
    %345 = math.exp %344 : vector<2x32xf32>
    %cst_75 = arith.constant 1.000000e+00 : f32
    %346 = vector.broadcast %cst_75 : f32 to vector<2x32xf32>
    %347 = arith.addf %346, %345 : vector<2x32xf32>
    %348 = arith.divf %346, %347 : vector<2x32xf32>
    %349 = vector.extract_strided_slice %336 {offsets = [0, 64], sizes = [2, 32], strides = [1, 1]} : vector<2x128xf32> to vector<2x32xf32>
    %350 = math.tanh %349 : vector<2x32xf32>
    %351 = vector.extract_strided_slice %336 {offsets = [0, 96], sizes = [2, 32], strides = [1, 1]} : vector<2x128xf32> to vector<2x32xf32>
    %352 = arith.negf %351 : vector<2x32xf32>
    %353 = math.exp %352 : vector<2x32xf32>
    %cst_76 = arith.constant 1.000000e+00 : f32
    %354 = vector.broadcast %cst_76 : f32 to vector<2x32xf32>
    %355 = arith.addf %354, %353 : vector<2x32xf32>
    %356 = arith.divf %354, %355 : vector<2x32xf32>
    %357 = arith.mulf %348, %331 : vector<2x32xf32>
    %358 = arith.mulf %342, %350 : vector<2x32xf32>
    %359 = arith.addf %357, %358 : vector<2x32xf32>
    %360 = math.tanh %359 : vector<2x32xf32>
    %361 = arith.mulf %356, %360 : vector<2x32xf32>
    %362 = vector.extract_strided_slice %246 {offsets = [8, 0], sizes = [2, 128], strides = [1, 1]} : vector<16x128xf32> to vector<2x128xf32>
    %cst_77 = arith.constant dense<0.000000e+00> : vector<2x128xf32>
    %363 = tpu.matmul %361, %247, %cst_77 {dimension_numbers = #tpu.dot_dimension_numbers<[1], [0], [0], [1], [0, 0, 1, 1], [], []>} : vector<2x32xf32>, vector<32x128xf32>, vector<2x128xf32> -> vector<2x128xf32>
    %364 = arith.addf %362, %363 : vector<2x128xf32>
    %365 = vector.extract_strided_slice %364 {offsets = [0, 0], sizes = [2, 32], strides = [1, 1]} : vector<2x128xf32> to vector<2x32xf32>
    %366 = arith.negf %365 : vector<2x32xf32>
    %367 = math.exp %366 : vector<2x32xf32>
    %cst_78 = arith.constant 1.000000e+00 : f32
    %368 = vector.broadcast %cst_78 : f32 to vector<2x32xf32>
    %369 = arith.addf %368, %367 : vector<2x32xf32>
    %370 = arith.divf %368, %369 : vector<2x32xf32>
    %371 = vector.extract_strided_slice %364 {offsets = [0, 32], sizes = [2, 32], strides = [1, 1]} : vector<2x128xf32> to vector<2x32xf32>
    %372 = arith.negf %371 : vector<2x32xf32>
    %373 = math.exp %372 : vector<2x32xf32>
    %cst_79 = arith.constant 1.000000e+00 : f32
    %374 = vector.broadcast %cst_79 : f32 to vector<2x32xf32>
    %375 = arith.addf %374, %373 : vector<2x32xf32>
    %376 = arith.divf %374, %375 : vector<2x32xf32>
    %377 = vector.extract_strided_slice %364 {offsets = [0, 64], sizes = [2, 32], strides = [1, 1]} : vector<2x128xf32> to vector<2x32xf32>
    %378 = math.tanh %377 : vector<2x32xf32>
    %379 = vector.extract_strided_slice %364 {offsets = [0, 96], sizes = [2, 32], strides = [1, 1]} : vector<2x128xf32> to vector<2x32xf32>
    %380 = arith.negf %379 : vector<2x32xf32>
    %381 = math.exp %380 : vector<2x32xf32>
    %cst_80 = arith.constant 1.000000e+00 : f32
    %382 = vector.broadcast %cst_80 : f32 to vector<2x32xf32>
    %383 = arith.addf %382, %381 : vector<2x32xf32>
    %384 = arith.divf %382, %383 : vector<2x32xf32>
    %385 = arith.mulf %376, %359 : vector<2x32xf32>
    %386 = arith.mulf %370, %378 : vector<2x32xf32>
    %387 = arith.addf %385, %386 : vector<2x32xf32>
    %388 = math.tanh %387 : vector<2x32xf32>
    %389 = arith.mulf %384, %388 : vector<2x32xf32>
    %390 = vector.extract_strided_slice %246 {offsets = [10, 0], sizes = [2, 128], strides = [1, 1]} : vector<16x128xf32> to vector<2x128xf32>
    %cst_81 = arith.constant dense<0.000000e+00> : vector<2x128xf32>
    %391 = tpu.matmul %389, %247, %cst_81 {dimension_numbers = #tpu.dot_dimension_numbers<[1], [0], [0], [1], [0, 0, 1, 1], [], []>} : vector<2x32xf32>, vector<32x128xf32>, vector<2x128xf32> -> vector<2x128xf32>
    %392 = arith.addf %390, %391 : vector<2x128xf32>
    %393 = vector.extract_strided_slice %392 {offsets = [0, 0], sizes = [2, 32], strides = [1, 1]} : vector<2x128xf32> to vector<2x32xf32>
    %394 = arith.negf %393 : vector<2x32xf32>
    %395 = math.exp %394 : vector<2x32xf32>
    %cst_82 = arith.constant 1.000000e+00 : f32
    %396 = vector.broadcast %cst_82 : f32 to vector<2x32xf32>
    %397 = arith.addf %396, %395 : vector<2x32xf32>
    %398 = arith.divf %396, %397 : vector<2x32xf32>
    %399 = vector.extract_strided_slice %392 {offsets = [0, 32], sizes = [2, 32], strides = [1, 1]} : vector<2x128xf32> to vector<2x32xf32>
    %400 = arith.negf %399 : vector<2x32xf32>
    %401 = math.exp %400 : vector<2x32xf32>
    %cst_83 = arith.constant 1.000000e+00 : f32
    %402 = vector.broadcast %cst_83 : f32 to vector<2x32xf32>
    %403 = arith.addf %402, %401 : vector<2x32xf32>
    %404 = arith.divf %402, %403 : vector<2x32xf32>
    %405 = vector.extract_strided_slice %392 {offsets = [0, 64], sizes = [2, 32], strides = [1, 1]} : vector<2x128xf32> to vector<2x32xf32>
    %406 = math.tanh %405 : vector<2x32xf32>
    %407 = vector.extract_strided_slice %392 {offsets = [0, 96], sizes = [2, 32], strides = [1, 1]} : vector<2x128xf32> to vector<2x32xf32>
    %408 = arith.negf %407 : vector<2x32xf32>
    %409 = math.exp %408 : vector<2x32xf32>
    %cst_84 = arith.constant 1.000000e+00 : f32
    %410 = vector.broadcast %cst_84 : f32 to vector<2x32xf32>
    %411 = arith.addf %410, %409 : vector<2x32xf32>
    %412 = arith.divf %410, %411 : vector<2x32xf32>
    %413 = arith.mulf %404, %387 : vector<2x32xf32>
    %414 = arith.mulf %398, %406 : vector<2x32xf32>
    %415 = arith.addf %413, %414 : vector<2x32xf32>
    %416 = math.tanh %415 : vector<2x32xf32>
    %417 = arith.mulf %412, %416 : vector<2x32xf32>
    %418 = vector.extract_strided_slice %246 {offsets = [12, 0], sizes = [2, 128], strides = [1, 1]} : vector<16x128xf32> to vector<2x128xf32>
    %cst_85 = arith.constant dense<0.000000e+00> : vector<2x128xf32>
    %419 = tpu.matmul %417, %247, %cst_85 {dimension_numbers = #tpu.dot_dimension_numbers<[1], [0], [0], [1], [0, 0, 1, 1], [], []>} : vector<2x32xf32>, vector<32x128xf32>, vector<2x128xf32> -> vector<2x128xf32>
    %420 = arith.addf %418, %419 : vector<2x128xf32>
    %421 = vector.extract_strided_slice %420 {offsets = [0, 0], sizes = [2, 32], strides = [1, 1]} : vector<2x128xf32> to vector<2x32xf32>
    %422 = arith.negf %421 : vector<2x32xf32>
    %423 = math.exp %422 : vector<2x32xf32>
    %cst_86 = arith.constant 1.000000e+00 : f32
    %424 = vector.broadcast %cst_86 : f32 to vector<2x32xf32>
    %425 = arith.addf %424, %423 : vector<2x32xf32>
    %426 = arith.divf %424, %425 : vector<2x32xf32>
    %427 = vector.extract_strided_slice %420 {offsets = [0, 32], sizes = [2, 32], strides = [1, 1]} : vector<2x128xf32> to vector<2x32xf32>
    %428 = arith.negf %427 : vector<2x32xf32>
    %429 = math.exp %428 : vector<2x32xf32>
    %cst_87 = arith.constant 1.000000e+00 : f32
    %430 = vector.broadcast %cst_87 : f32 to vector<2x32xf32>
    %431 = arith.addf %430, %429 : vector<2x32xf32>
    %432 = arith.divf %430, %431 : vector<2x32xf32>
    %433 = vector.extract_strided_slice %420 {offsets = [0, 64], sizes = [2, 32], strides = [1, 1]} : vector<2x128xf32> to vector<2x32xf32>
    %434 = math.tanh %433 : vector<2x32xf32>
    %435 = vector.extract_strided_slice %420 {offsets = [0, 96], sizes = [2, 32], strides = [1, 1]} : vector<2x128xf32> to vector<2x32xf32>
    %436 = arith.negf %435 : vector<2x32xf32>
    %437 = math.exp %436 : vector<2x32xf32>
    %cst_88 = arith.constant 1.000000e+00 : f32
    %438 = vector.broadcast %cst_88 : f32 to vector<2x32xf32>
    %439 = arith.addf %438, %437 : vector<2x32xf32>
    %440 = arith.divf %438, %439 : vector<2x32xf32>
    %441 = arith.mulf %432, %415 : vector<2x32xf32>
    %442 = arith.mulf %426, %434 : vector<2x32xf32>
    %443 = arith.addf %441, %442 : vector<2x32xf32>
    %444 = math.tanh %443 : vector<2x32xf32>
    %445 = arith.mulf %440, %444 : vector<2x32xf32>
    %446 = vector.extract_strided_slice %246 {offsets = [14, 0], sizes = [2, 128], strides = [1, 1]} : vector<16x128xf32> to vector<2x128xf32>
    %cst_89 = arith.constant dense<0.000000e+00> : vector<2x128xf32>
    %447 = tpu.matmul %445, %247, %cst_89 {dimension_numbers = #tpu.dot_dimension_numbers<[1], [0], [0], [1], [0, 0, 1, 1], [], []>} : vector<2x32xf32>, vector<32x128xf32>, vector<2x128xf32> -> vector<2x128xf32>
    %448 = arith.addf %446, %447 : vector<2x128xf32>
    %449 = vector.extract_strided_slice %448 {offsets = [0, 0], sizes = [2, 32], strides = [1, 1]} : vector<2x128xf32> to vector<2x32xf32>
    %450 = arith.negf %449 : vector<2x32xf32>
    %451 = math.exp %450 : vector<2x32xf32>
    %cst_90 = arith.constant 1.000000e+00 : f32
    %452 = vector.broadcast %cst_90 : f32 to vector<2x32xf32>
    %453 = arith.addf %452, %451 : vector<2x32xf32>
    %454 = arith.divf %452, %453 : vector<2x32xf32>
    %455 = vector.extract_strided_slice %448 {offsets = [0, 32], sizes = [2, 32], strides = [1, 1]} : vector<2x128xf32> to vector<2x32xf32>
    %456 = arith.negf %455 : vector<2x32xf32>
    %457 = math.exp %456 : vector<2x32xf32>
    %cst_91 = arith.constant 1.000000e+00 : f32
    %458 = vector.broadcast %cst_91 : f32 to vector<2x32xf32>
    %459 = arith.addf %458, %457 : vector<2x32xf32>
    %460 = arith.divf %458, %459 : vector<2x32xf32>
    %461 = vector.extract_strided_slice %448 {offsets = [0, 64], sizes = [2, 32], strides = [1, 1]} : vector<2x128xf32> to vector<2x32xf32>
    %462 = math.tanh %461 : vector<2x32xf32>
    %463 = vector.extract_strided_slice %448 {offsets = [0, 96], sizes = [2, 32], strides = [1, 1]} : vector<2x128xf32> to vector<2x32xf32>
    %464 = arith.negf %463 : vector<2x32xf32>
    %465 = math.exp %464 : vector<2x32xf32>
    %cst_92 = arith.constant 1.000000e+00 : f32
    %466 = vector.broadcast %cst_92 : f32 to vector<2x32xf32>
    %467 = arith.addf %466, %465 : vector<2x32xf32>
    %468 = arith.divf %466, %467 : vector<2x32xf32>
    %469 = arith.mulf %460, %443 : vector<2x32xf32>
    %470 = arith.mulf %454, %462 : vector<2x32xf32>
    %471 = arith.addf %469, %470 : vector<2x32xf32>
    %472 = math.tanh %471 : vector<2x32xf32>
    %473 = arith.mulf %468, %472 : vector<2x32xf32>
    %c0_93 = arith.constant 0 : index
    %c0_94 = arith.constant 0 : index
    %474 = vector.load %arg7[%c0_93, %c0_94] : memref<32x2xf32, #tpu.memory_space<vmem>>, vector<32x2xf32>
    %cst_95 = arith.constant dense<0.000000e+00> : vector<2x2xf32>
    %475 = tpu.matmul %473, %474, %cst_95 {dimension_numbers = #tpu.dot_dimension_numbers<[1], [0], [0], [1], [0, 0, 1, 1], [], []>} : vector<2x32xf32>, vector<32x2xf32>, vector<2x2xf32> -> vector<2x2xf32>
    %c0_96 = arith.constant 0 : index
    %c0_97 = arith.constant 0 : index
    %476 = vector.load %arg8[%c0_96, %c0_97] : memref<1x2xf32, #tpu.memory_space<vmem>>, vector<1x2xf32>
    %477 = vector.broadcast %476 : vector<1x2xf32> to vector<2x2xf32>
    %478 = arith.addf %475, %477 : vector<2x2xf32>
    %c0_98 = arith.constant 0 : index
    %c0_99 = arith.constant 0 : index
    %479 = vector.load %arg9[%c0_98, %c0_99] : memref<2x2xf32, #tpu.memory_space<vmem>>, vector<2x2xf32>
    tpu.vector_store %arg9[%c0_98, %c0_99], %478 {strides = array<i32>} : memref<2x2xf32, #tpu.memory_space<vmem>>, vector<2x2xf32>,
    return
  }
}

</mosaic_0001>

<bundles_post_ra>
// kernel: lstm_forward.1
= control target key start
LH: loop header
LB: loop body
LE: loop exit
PB: predicated region body
PF: predicated region fallthrough
CT: control target
= control target key end

     0   :  { %14 = vsyncpa [#allocation4], 0  ;;  %s1862_s0 = inlined_call_operand.vmem [shape: f32[16,16], index: 0, kind: input, shape index: {}]   ;;  %s1863_s1 = inlined_call_operand.hbm [shape: f32[16,128], index: 1, kind: input, shape index: {}]   ;;  %s1864_s2 = inlined_call_operand.vmem [shape: f32[32,128], index: 2, kind: input, shape index: {}]   ;;  %s1865_s3 = inlined_call_operand.vmem [shape: f32[1,128], index: 3, kind: input, shape index: {}]   ;;  %s1866_s4 = inlined_call_operand.vmem [shape: f32[32,128], index: 4, kind: input, shape index: {}]   ;;  %s1867_s5 = inlined_call_operand.hbm [shape: f32[32,128], index: 5, kind: input, shape index: {}]   ;;  %s1868_s6 = inlined_call_operand.vmem [shape: f32[1,128], index: 6, kind: input, shape index: {}]   ;;  %s1869_s7 = inlined_call_operand.vmem [shape: f32[32,2], index: 7, kind: input, shape index: {}]   ;;  %s1870_s8 = inlined_call_operand.vmem [shape: f32[1,2], index: 8, kind: input, shape index: {}]   ;;  %s1871_s9 = inlined_call_operand.vmem [shape: f32[2,2], index: 9, kind: output, shape index: {}]  }
   0x1   :  { %s22_s11 = sshll.u32 %s1863_s1, 4  ;;  %s23_s11 = int_to_ptr.hbm [resolvable:$true] %s22_s11 }
   0x2   :  { %15 = vsyncpa [#allocation6], 0  ;;  %s1539_s12 = smov [#allocation3]   ;;  %s41_s16 = sshll.u32 %s1867_s5, 4  ;;  %s42_s16 = int_to_ptr.hbm [resolvable:$true] %s41_s16 }
   0x3   :  { %s24_s13 = sshll.u32 %s1539_s12, 4  ;;  %s1540_s17 = smov 128   ;;  %s25_s13 = int_to_ptr.vmem [resolvable:$true] %s24_s13 }
   0x4   :  { %s1541_s18 = smov 8   ;;  %s1542_s19 = smov [#allocation5]  }
   0x5   :  { %30 = dma.hbm_to_vmem [thread:$0]  %s23_s11, 256, %s25_s13, [#allocation4], %s1540_s17, %s1540_s17, %s1541_s18  }
   0x6   :  { %s43_s20 = sshll.u32 %s1542_s19, 4  ;;  %s44_s20 = int_to_ptr.vmem [resolvable:$true] %s43_s20 }
   0x7   :  { %49 = dma.hbm_to_vmem [thread:$0]  %s42_s16, 512, %s44_s20, [#allocation6], %s1540_s17, %s1540_s17, %s1541_s18  }
   0x8   :  { %1535 = dma.done.wait [#allocation4], 256  }
   0x9   :  { %1536 = vsyncadd [#allocation4], 4294967040 }
   0xa   :  { %1537 = dma.done.wait [#allocation6], 512  }
   0xb   :  { %1538 = vsyncadd [#allocation6], 4294966784  ;;  %v105_v0 = vld [vmem:[%s1864_s2 + $0x18] sm:$0xff]  ;;  %v104_v2 = vld [vmem:[%s1864_s2 + $0x10] sm:$0xff]  ;;  %vm72_vm0 = vcmask 130048   ;;  %v1543_v7 = vmov 0.0  }
   0xc   :  { %v67_v1 = vld [vmem:[#allocation3 + $0x8] sm:$0xff]  ;;  %122 = vmatpush.msra.mxu1 %v105_v0  ;;  %v66_v3 = vld [vmem:[#allocation3] sm:$0xff]  ;;  %v64_v4 = vld [vmem:[%s1862_s0] sm:$0xff]  ;;  %188 = vmatpush.msra.mxu2 %v105_v0  ;;  %s1544_s30 = smov 64   ;;  %vm172_vm5 = vcmask 254976   ;;  %vm106_vm6 = vcmask 261120  }
   0xd   :  { %93 = vmatpush.msra.mxu0 %v67_v1  ;;  %v103_v5 = vld [vmem:[%s1864_s2 + $0x8] sm:$0xff]  ;;  %263 = vmatpush.msra.mxu3 %v105_v0  ;;  %v102_v6 = vld [vmem:[%s1864_s2] sm:$0xff] }
   0xe   :  { %123 = vmatpush.msra.mxu1 %v104_v2  ;;  %189 = vmatpush.msra.mxu2 %v104_v2  ;;  %v1622_v8 = vld [vmem:[%s1865_s3] ss:$0 sm:$0xff]  ;;  %s1545_s3 = smov 32  }
   0xf   :  { %94 = vmatpush.msra.mxu0 %v66_v3  ;;  %264 = vmatpush.msra.mxu3 %v104_v2 }
  0x10   :  { %1314 = vmatmul.msk.f32.vlgmr.msra.gmra.mxu0 %vm72_vm0, %v64_v4  ;;  %124 = vmatpush.msra.mxu1 %v103_v5 }
  0x11   :  { %190 = vmatpush.msra.mxu2 %v103_v5  ;;  %555 = vmatpush.msrb.mxu0 %v105_v0 }
  0x12   :  { %125 = vmatpush.msra.mxu1 %v102_v6  ;;  %265 = vmatpush.msra.mxu3 %v103_v5 }
  0x13   :  { %126 = vmatmul.f32.vlgmr.msra.gmra.mxu1 %v1543_v7  ;;  %191 = vmatpush.msra.mxu2 %v102_v6 }
  0x14   :  { %266 = vmatpush.msra.mxu3 %v102_v6  ;;  %338 = vmatpush.msrb.mxu1 %v105_v0 }
  0x15   :  { %413 = vmatpush.msrb.mxu2 %v105_v0  ;;  %556 = vmatpush.msrb.mxu0 %v104_v2 }
  0x16   :  { %481 = vmatpush.msrb.mxu3 %v105_v0  ;;  %339 = vmatpush.msrb.mxu1 %v104_v2 }
  0x17   :  { %414 = vmatpush.msrb.mxu2 %v104_v2  ;;  %557 = vmatpush.msrb.mxu0 %v103_v5 }
  0x18   :  { %482 = vmatpush.msrb.mxu3 %v104_v2  ;;  %340 = vmatpush.msrb.mxu1 %v103_v5 }
  0x19   :  { %415 = vmatpush.msrb.mxu2 %v103_v5  ;;  %558 = vmatpush.msrb.mxu0 %v102_v6 }
  0x1a   :  { %483 = vmatpush.msrb.mxu3 %v103_v5  ;;  %341 = vmatpush.msrb.mxu1 %v102_v6 }
  0x1b   :  { %416 = vmatpush.msrb.mxu2 %v102_v6 }
  0x1c   :  { %484 = vmatpush.msrb.mxu3 %v102_v6  ;;  %629 = vmatpush.msra.mxu1 %v105_v0 }
  0x1e   :  { %630 = vmatpush.msra.mxu1 %v104_v2 }
  0x20   :  { %631 = vmatpush.msra.mxu1 %v103_v5 }
  0x22   :  { %632 = vmatpush.msra.mxu1 %v102_v6 }
  0x8d   :  { %v96_v9 = vpop.f32.mrf.mxu0 }
  0x8e   :  { %v1625_v10 = vadd.f32 %v1622_v8, %v96_v9 }
  0x90   :  { %v127_v11 = vpop.f32.mrf.mxu1 }
  0x91   :  { %v130_v12 = vadd.f32 %v127_v11, %v1625_v10 }
  0x93   :  { %1359 = vtanh.f32 %v130_v12  ;;  %v1316_v14 = vmul.f32 -1.442695, %v130_v12 }
  0x95   :  { %1361 = vpow2.f32 %v1316_v14 }
  0x99   :  { %v1360_v13 = vpop.eup %1359 }
  0x9a   :  { %153 = vrot.lane.b32.xlu0 %v1360_v13, %s1544_s30 }
  0x9b   :  { %v1362_v15 = vpop.eup %1361 }
  0x9c   :  { %v134_v16 = vadd.f32 1.0, %v1362_v15 }
  0x9e   :  { %1363 = vrcp.f32 %v134_v16  ;;  %v146_v22 = vand.u32 2147483648, %v134_v16  ;;  %vm140_vm2 = vweird.f32 %v134_v16  ;;  %v144_v23 = vand.u32 2147483647, %v134_v16 }
  0xa0   :  { %v147_v25 = vor.u32 1.1754944e-38, %v146_v22  ;;  %vm145_vm4 = vcmp.eq.f32.partialorder %v144_v23, 8.507059e+37 }
  0xa4   :  { %v1364_v17 = vpop.eup %1363 }
  0xa5   :  { %v136_v18 = vmul.f32 %v1364_v17, %v134_v16  ;;  %vm141_vm1 = vweird.f32 %v1364_v17 }
  0xa6   :  { %vm142_vm3 = vmor %vm140_vm2, %vm141_vm1 }
  0xa7   :  { %v137_v19 = vsub.f32 1.0, %v136_v18 }
  0xa9   :  { %v138_v20 = vmul.f32 %v1364_v17, %v137_v19 }
  0xab   :  { %v139_v21 = vadd.f32 %v1364_v17, %v138_v20 }
  0xad   :  { %v143_v24 = vsel %vm142_vm3, %v1364_v17, %v139_v21 }
  0xae   :  { %v148_v27 = vsel %vm145_vm4, %v147_v25, %v143_v24 }
  0xaf   :  { %v151_v29 = vmul.f32 0.0, %v148_v27 }
 0x10c   :  { %v154_v26 = vpop.permute.xlu0 %153 }
 0x10d   :  { %v156_v28 = vmul.f32 %v154_v26, %v148_v27 }
 0x10f   :  { %158 = vrot.lane.b32.xlu0 %v156_v28, %s1545_s3 }
 0x181   :  { %v159_v30 = vpop.permute.xlu0 %158 }
 0x182   :  { %v161_v31 = vadd.f32 %v159_v30, %v151_v29 }
 0x184   :  { %1365 = vtanh.f32 %v161_v31  ;;  %v221_v55 = vrot.slane %v161_v31, 6 }
 0x18a   :  { %v1366_v32 = vpop.eup %1365 }
 0x18b   :  { %164 = vrot.lane.b32.xlu1 %v1366_v32, %s1544_s30 }
 0x1fd   :  { %v165_v33 = vpop.permute.xlu1 %164 }
 0x1fe   :  { %v167_v34 = vmul.f32 %v165_v33, %v148_v27 }
 0x200   :  { %169 = vrot.lane.b32.xlu1 %v167_v34, %s1545_s3 }
 0x272   :  { %v170_v35 = vpop.permute.xlu1 %169 }
 0x273   :  { %173 = vst.msk [vmem:[#allocation2] sm:$0x3] %vm172_vm5, %v170_v35  ;;  %1317 = vmatmul.msk.f32.vlgmr.msra.gmra.mxu2 %vm106_vm6, %v170_v35 }
 0x2f6   :  { %v193_v36 = vpop.f32.mrf.mxu2 }
 0x2f7   :  { %v197_v37 = vrot.slane %v193_v36, 6 }
 0x2f9   :  { %v199_v38 = vadd.f32 %v197_v37, %v1625_v10 }
 0x2fb   :  { %1367 = vtanh.f32 %v199_v38  ;;  %v1318_v40 = vmul.f32 -1.442695, %v199_v38 }
 0x2fd   :  { %1369 = vpow2.f32 %v1318_v40 }
 0x301   :  { %v1368_v39 = vpop.eup %1367 }
 0x302   :  { %225 = vrot.lane.b32.xlu2 %v1368_v39, %s1544_s30 }
 0x303   :  { %v1370_v41 = vpop.eup %1369 }
 0x304   :  { %v203_v42 = vadd.f32 1.0, %v1370_v41 }
 0x306   :  { %1371 = vrcp.f32 %v203_v42  ;;  %v215_v48 = vand.u32 2147483648, %v203_v42  ;;  %vm209_vm8 = vweird.f32 %v203_v42  ;;  %v213_v49 = vand.u32 2147483647, %v203_v42 }
 0x308   :  { %v216_v51 = vor.u32 1.1754944e-38, %v215_v48  ;;  %vm214_vm10 = vcmp.eq.f32.partialorder %v213_v49, 8.507059e+37 }
 0x30c   :  { %v1372_v43 = vpop.eup %1371 }
 0x30d   :  { %v205_v44 = vmul.f32 %v1372_v43, %v203_v42  ;;  %vm210_vm7 = vweird.f32 %v1372_v43 }
 0x30e   :  { %vm211_vm9 = vmor %vm209_vm8, %vm210_vm7 }
 0x30f   :  { %v206_v45 = vsub.f32 1.0, %v205_v44 }
 0x311   :  { %v207_v46 = vmul.f32 %v1372_v43, %v206_v45 }
 0x313   :  { %v208_v47 = vadd.f32 %v1372_v43, %v207_v46 }
 0x315   :  { %v212_v50 = vsel %vm211_vm9, %v1372_v43, %v208_v47  ;;  %vm244_vm9 = vcmask 257026  }
 0x316   :  { %v217_v53 = vsel %vm214_vm10, %v216_v51, %v212_v50  ;;  %vm319_vm10 = vcmask 259076  }
 0x317   :  { %v223_v56 = vmul.f32 %v221_v55, %v217_v53 }
 0x35c   :  { %v226_v52 = vpop.permute.xlu2 %225 }
 0x35d   :  { %v228_v54 = vmul.f32 %v226_v52, %v217_v53 }
 0x35f   :  { %230 = vrot.lane.b32.xlu2 %v228_v54, %s1545_s3 }
 0x3b9   :  { %v231_v57 = vpop.permute.xlu2 %230 }
 0x3ba   :  { %v233_v58 = vadd.f32 %v231_v57, %v223_v56  ;;  %v65_v57 = vld [vmem:[%s1862_s0 + $0x8] sm:$0xff] }
 0x3bb   :  { %1315 = vmatmul.msk.f32.gmra.mxu0 %vm72_vm0, %v65_v57 }
 0x3bc   :  { %1373 = vtanh.f32 %v233_v58  ;;  %v296_v22 = vrot.slane %v233_v58, 6 }
 0x3c2   :  { %v1374_v59 = vpop.eup %1373 }
 0x3c3   :  { %236 = vrot.lane.b32.xlu0 %v1374_v59, %s1544_s30 }
 0x435   :  { %v237_v60 = vpop.permute.xlu0 %236 }
 0x436   :  { %v1638_v61 = vmul.f32 %v237_v60, %v217_v53 }
 0x438   :  { %v246_v62 = vrot.slane %v1638_v61, 2  ;;  %v99_v59 = vpop.f32.mrf.mxu0 }
 0x439   :  { %v1663_v60 = vadd.f32 %v1622_v8, %v99_v59 }
 0x43a   :  { %247 = vrot.lane.b32.xlu1 %v246_v62, %s1545_s3 }
 0x4ac   :  { %v248_v63 = vpop.permute.xlu1 %247 }
 0x4ad   :  { %1319 = vmatmul.msk.f32.vlgmr.msra.gmra.mxu3 %vm106_vm6, %v248_v63 }
 0x530   :  { %v268_v0 = vpop.f32.mrf.mxu3 }
 0x531   :  { %v272_v1 = vrot.slane %v268_v0, 4 }
 0x533   :  { %v274_v2 = vadd.f32 %v272_v1, %v1625_v10 }
 0x535   :  { %1375 = vtanh.f32 %v274_v2  ;;  %v1320_v4 = vmul.f32 -1.442695, %v274_v2 }
 0x537   :  { %1377 = vpow2.f32 %v1320_v4 }
 0x53b   :  { %v1376_v3 = vpop.eup %1375 }
 0x53c   :  { %300 = vrot.lane.b32.xlu2 %v1376_v3, %s1544_s30 }
 0x53d   :  { %v1378_v5 = vpop.eup %1377 }
 0x53e   :  { %v278_v6 = vadd.f32 1.0, %v1378_v5 }
 0x540   :  { %1379 = vrcp.f32 %v278_v6  ;;  %v290_v15 = vand.u32 2147483648, %v278_v6  ;;  %vm284_vm12 = vweird.f32 %v278_v6  ;;  %v288_v16 = vand.u32 2147483647, %v278_v6 }
 0x542   :  { %v291_v18 = vor.u32 1.1754944e-38, %v290_v15  ;;  %vm289_vm14 = vcmp.eq.f32.partialorder %v288_v16, 8.507059e+37 }
 0x546   :  { %v1380_v9 = vpop.eup %1379 }
 0x547   :  { %v280_v11 = vmul.f32 %v1380_v9, %v278_v6  ;;  %vm285_vm11 = vweird.f32 %v1380_v9 }
 0x548   :  { %vm286_vm13 = vmor %vm284_vm12, %vm285_vm11  ;;  %vm394_vm11 = vcmask 261126  }
 0x549   :  { %v281_v12 = vsub.f32 1.0, %v280_v11 }
 0x54b   :  { %v282_v13 = vmul.f32 %v1380_v9, %v281_v12 }
 0x54d   :  { %v283_v14 = vadd.f32 %v1380_v9, %v282_v13 }
 0x54f   :  { %v287_v17 = vsel %vm286_vm13, %v1380_v9, %v283_v14 }
 0x550   :  { %v292_v20 = vsel %vm289_vm14, %v291_v18, %v287_v17 }
 0x551   :  { %v298_v23 = vmul.f32 %v296_v22, %v292_v20 }
 0x596   :  { %v301_v19 = vpop.permute.xlu2 %300 }
 0x597   :  { %v303_v21 = vmul.f32 %v301_v19, %v292_v20 }
 0x599   :  { %305 = vrot.lane.b32.xlu0 %v303_v21, %s1545_s3 }
 0x60b   :  { %v306_v24 = vpop.permute.xlu0 %305 }
 0x60c   :  { %v308_v25 = vadd.f32 %v306_v24, %v298_v23 }
 0x60e   :  { %1381 = vtanh.f32 %v308_v25  ;;  %v371_v49 = vrot.slane %v308_v25, 6 }
 0x614   :  { %v1382_v26 = vpop.eup %1381 }
 0x615   :  { %311 = vrot.lane.b32.xlu1 %v1382_v26, %s1544_s30  ;;  %v691_v26 = vld [vmem:[%s1866_s4 + $0x18] sm:$0xff] }
 0x616   :  { %714 = vmatpush.msra.mxu2 %v691_v26 }
 0x687   :  { %v312_v27 = vpop.permute.xlu1 %311 }
 0x688   :  { %v1647_v28 = vmul.f32 %v312_v27, %v292_v20  ;;  %v690_v27 = vld [vmem:[%s1866_s4 + $0x10] sm:$0xff] }
 0x689   :  { %715 = vmatpush.msra.mxu2 %v690_v27 }
 0x68a   :  { %v321_v29 = vrot.slane %v1647_v28, 4 }
 0x68c   :  { %322 = vrot.lane.b32.xlu2 %v321_v29, %s1545_s3  ;;  %v1686_v29 = vld [vmem:[#allocation5 + $0x18] sm:$0xff] }
 0x68d   :  { %741 = vmatpush.msra.mxu3 %v1686_v29  ;;  %804 = vmatpush.msra.mxu0 %v1686_v29 }
 0x6e6   :  { %v323_v30 = vpop.permute.xlu2 %322 }
 0x6e7   :  { %1321 = vmatmul.msk.f32.vlgmr.msrb.gmra.mxu1 %vm106_vm6, %v323_v30  ;;  %v689_v30 = vld [vmem:[%s1866_s4 + $0x8] sm:$0xff] }
 0x6e8   :  { %874 = vmatpush.msrb.mxu1 %v1686_v29  ;;  %716 = vmatpush.msra.mxu2 %v689_v30 }
 0x764   :  { %v343_v31 = vpop.f32.mrf.mxu1 }
 0x765   :  { %v347_v32 = vrot.slane %v343_v31, 2  ;;  %v1694_v31 = vld [vmem:[#allocation5 + $0x8] sm:$0xff] }
 0x767   :  { %v349_v33 = vadd.f32 %v347_v32, %v1625_v10  ;;  %v688_v32 = vld [vmem:[%s1866_s4] sm:$0xff] }
 0x768   :  { %717 = vmatpush.msra.mxu2 %v688_v32 }
 0x769   :  { %1383 = vtanh.f32 %v349_v33  ;;  %v1322_v35 = vmul.f32 -1.442695, %v349_v33  ;;  %v1707_v33 = vld [vmem:[#allocation5] sm:$0xff] }
 0x76b   :  { %1385 = vpow2.f32 %v1322_v35 }
 0x76f   :  { %v1384_v34 = vpop.eup %1383 }
 0x770   :  { %375 = vrot.lane.b32.xlu0 %v1384_v34, %s1544_s30 }
 0x771   :  { %v1386_v36 = vpop.eup %1385 }
 0x772   :  { %v353_v37 = vadd.f32 1.0, %v1386_v36 }
 0x774   :  { %1387 = vrcp.f32 %v353_v37  ;;  %v365_v43 = vand.u32 2147483648, %v353_v37  ;;  %vm359_vm1 = vweird.f32 %v353_v37  ;;  %v363_v44 = vand.u32 2147483647, %v353_v37 }
 0x776   :  { %v366_v45 = vor.u32 1.1754944e-38, %v365_v43  ;;  %vm364_vm3 = vcmp.eq.f32.partialorder %v363_v44, 8.507059e+37 }
 0x77a   :  { %v1388_v38 = vpop.eup %1387 }
 0x77b   :  { %v355_v39 = vmul.f32 %v1388_v38, %v353_v37  ;;  %vm360_vm15 = vweird.f32 %v1388_v38 }
 0x77c   :  { %vm361_vm2 = vmor %vm359_vm1, %vm360_vm15 }
 0x77d   :  { %v356_v40 = vsub.f32 1.0, %v355_v39 }
 0x77f   :  { %v357_v41 = vmul.f32 %v1388_v38, %v356_v40 }
 0x781   :  { %v358_v42 = vadd.f32 %v1388_v38, %v357_v41 }
 0x783   :  { %v362_v10 = vsel %vm361_vm2, %v1388_v38, %v358_v42 }
 0x784   :  { %v367_v47 = vsel %vm364_vm3, %v366_v45, %v362_v10 }
 0x785   :  { %v373_v50 = vmul.f32 %v371_v49, %v367_v47 }
 0x7e2   :  { %v376_v46 = vpop.permute.xlu0 %375 }
 0x7e3   :  { %v378_v48 = vmul.f32 %v376_v46, %v367_v47 }
 0x7e5   :  { %380 = vrot.lane.b32.xlu1 %v378_v48, %s1545_s3 }
 0x857   :  { %v381_v51 = vpop.permute.xlu1 %380 }
 0x858   :  { %v383_v52 = vadd.f32 %v381_v51, %v373_v50 }
 0x85a   :  { %1389 = vtanh.f32 %v383_v52  ;;  %v443_v18 = vrot.slane %v383_v52, 6 }
 0x860   :  { %v1390_v53 = vpop.eup %1389 }
 0x861   :  { %386 = vrot.lane.b32.xlu2 %v1390_v53, %s1544_s30 }
 0x8bb   :  { %v387_v54 = vpop.permute.xlu2 %386 }
 0x8bc   :  { %v389_v55 = vmul.f32 %v387_v54, %v367_v47 }
 0x8be   :  { %v396_v56 = vrot.slane %v389_v55, 6 }
 0x8c0   :  { %397 = vrot.lane.b32.xlu0 %v396_v56, %s1545_s3 }
 0x932   :  { %v398_v58 = vpop.permute.xlu0 %397 }
 0x933   :  { %1323 = vmatmul.msk.f32.vlgmr.msrb.gmra.mxu2 %vm106_vm6, %v398_v58 }
 0x934   :  { %1150 = vmatpush.msrb.mxu2 %v1686_v29 }
 0x9b6   :  { %v418_v62 = vpop.f32.mrf.mxu2 }
 0x9b7   :  { %v421_v63 = vadd.f32 %v418_v62, %v1663_v60 }
 0x9b9   :  { %1391 = vtanh.f32 %v421_v63  ;;  %v1324_v1 = vmul.f32 -1.442695, %v421_v63 }
 0x9bb   :  { %1393 = vpow2.f32 %v1324_v1 }
 0x9bf   :  { %v1392_v0 = vpop.eup %1391 }
 0x9c0   :  { %447 = vrot.lane.b32.xlu1 %v1392_v0, %s1544_s30 }
 0x9c1   :  { %v1394_v2 = vpop.eup %1393 }
 0x9c2   :  { %v425_v3 = vadd.f32 1.0, %v1394_v2 }
 0x9c4   :  { %1395 = vrcp.f32 %v425_v3  ;;  %v437_v8 = vand.u32 2147483648, %v425_v3  ;;  %vm431_vm4 = vweird.f32 %v425_v3  ;;  %v435_v12 = vand.u32 2147483647, %v425_v3 }
 0x9c6   :  { %v438_v14 = vor.u32 1.1754944e-38, %v437_v8  ;;  %vm436_vm8 = vcmp.eq.f32.partialorder %v435_v12, 8.507059e+37 }
 0x9ca   :  { %v1396_v4 = vpop.eup %1395 }
 0x9cb   :  { %v427_v5 = vmul.f32 %v1396_v4, %v425_v3  ;;  %vm432_vm0 = vweird.f32 %v1396_v4 }
 0x9cc   :  { %vm433_vm7 = vmor %vm431_vm4, %vm432_vm0 }
 0x9cd   :  { %v428_v6 = vsub.f32 1.0, %v427_v5 }
 0x9cf   :  { %v429_v9 = vmul.f32 %v1396_v4, %v428_v6 }
 0x9d1   :  { %v430_v11 = vadd.f32 %v1396_v4, %v429_v9 }
 0x9d3   :  { %v434_v13 = vsel %vm433_vm7, %v1396_v4, %v430_v11 }
 0x9d4   :  { %v439_v16 = vsel %vm436_vm8, %v438_v14, %v434_v13 }
 0x9d5   :  { %v445_v19 = vmul.f32 %v443_v18, %v439_v16 }
 0xa32   :  { %v448_v15 = vpop.permute.xlu1 %447 }
 0xa33   :  { %v450_v17 = vmul.f32 %v448_v15, %v439_v16 }
 0xa35   :  { %452 = vrot.lane.b32.xlu2 %v450_v17, %s1545_s3 }
 0xa3d   :  { %241 = vrot.lane.b32.xlu2 %v1638_v61, %s1545_s3 }
 0xa8f   :  { %v453_v20 = vpop.permute.xlu2 %452 }
 0xa90   :  { %v1670_v21 = vadd.f32 %v453_v20, %v445_v19 }
 0xa92   :  { %1397 = vtanh.f32 %v1670_v21  ;;  %v514_v15 = vrot.slane %v1670_v21, 6 }
 0xa97   :  { %v242_v22 = vpop.permute.xlu2 %241 }
 0xa98   :  { %v1398_v23 = vpop.eup %1397  ;;  %245 = vst.msk [vmem:[#allocation2] sm:$0xc] %vm244_vm9, %v242_v22 }
 0xa99   :  { %458 = vrot.lane.b32.xlu0 %v1398_v23, %s1544_s30 }
 0xaa1   :  { %316 = vrot.lane.b32.xlu0 %v1647_v28, %s1545_s3  ;;  %v1689_v28 = vld [vmem:[#allocation5 + $0x10] sm:$0xff] }
 0xaa2   :  { %742 = vmatpush.msra.mxu3 %v1689_v28  ;;  %805 = vmatpush.msra.mxu0 %v1689_v28 }
 0xaa3   :  { %875 = vmatpush.msrb.mxu1 %v1689_v28  ;;  %1151 = vmatpush.msrb.mxu2 %v1689_v28 }
 0xaa4   :  { %743 = vmatpush.msra.mxu3 %v1694_v31  ;;  %806 = vmatpush.msra.mxu0 %v1694_v31 }
 0xaa5   :  { %876 = vmatpush.msrb.mxu1 %v1694_v31  ;;  %1152 = vmatpush.msrb.mxu2 %v1694_v31 }
 0xaa6   :  { %744 = vmatpush.msra.mxu3 %v1707_v33  ;;  %807 = vmatpush.msra.mxu0 %v1707_v33 }
 0xaa7   :  { %877 = vmatpush.msrb.mxu1 %v1707_v33  ;;  %1153 = vmatpush.msrb.mxu2 %v1707_v33 }
 0xb0b   :  { %v459_v24 = vpop.permute.xlu0 %458 }
 0xb0c   :  { %v461_v25 = vmul.f32 %v459_v24, %v439_v16 }
 0xb0e   :  { %463 = vrot.lane.b32.xlu1 %v461_v25, %s1545_s3 }
 0xb13   :  { %v317_v61 = vpop.permute.xlu0 %316 }
 0xb14   :  { %320 = vst.msk [vmem:[#allocation2] sm:$0x30] %vm319_vm10, %v317_v61 }
 0xb16   :  { %391 = vrot.lane.b32.xlu1 %v389_v55, %s1545_s3 }
 0xb80   :  { %v464_v34 = vpop.permute.xlu1 %463 }
 0xb81   :  { %466 = vst.msk [vmem:[#allocation2 + $0x8] sm:$0x3] %vm172_vm5, %v464_v34  ;;  %1325 = vmatmul.msk.f32.vlgmr.msrb.gmra.mxu3 %vm106_vm6, %v464_v34 }
 0xb82   :  { %944 = vmatpush.msrb.mxu3 %v1686_v29 }
 0xb84   :  { %945 = vmatpush.msrb.mxu3 %v1689_v28 }
 0xb86   :  { %946 = vmatpush.msrb.mxu3 %v1694_v31 }
 0xb88   :  { %v392_v35 = vpop.permute.xlu1 %391  ;;  %947 = vmatpush.msrb.mxu3 %v1707_v33 }
 0xb89   :  { %395 = vst.msk [vmem:[#allocation2] sm:$0xc0] %vm394_vm11, %v392_v35  ;;  %745 = vmatmul.f32.vlgmr.msra.gmra.mxu3 %v1543_v7  ;;  %v1734_v7 = vld [vmem:[%s1868_s6] ss:$0 sm:$0xff] }
 0xb8a   :  { %1220 = vmatpush.msra.mxu3 %v1686_v29 }
 0xb8c   :  { %1221 = vmatpush.msra.mxu3 %v1689_v28 }
 0xb8e   :  { %1222 = vmatpush.msra.mxu3 %v1694_v31 }
 0xb90   :  { %v686_v36 = vld [vmem:[#allocation2] sm:$0xff]  ;;  %1223 = vmatpush.msra.mxu3 %v1707_v33 }
 0xb91   :  { %1331 = vmatmul.msk.f32.vlgmr.msra.gmra.mxu2 %vm106_vm6, %v686_v36 }
 0xc04   :  { %v486_v37 = vpop.f32.mrf.mxu3 }
 0xc05   :  { %v490_v38 = vrot.slane %v486_v37, 6 }
 0xc07   :  { %v492_v39 = vadd.f32 %v490_v38, %v1663_v60 }
 0xc09   :  { %1399 = vtanh.f32 %v492_v39  ;;  %v1326_v45 = vmul.f32 -1.442695, %v492_v39 }
 0xc0c   :  { %v746_v42 = vpop.f32.mrf.mxu3 }
 0xc0f   :  { %v1400_v40 = vpop.eup %1399 }
 0xc10   :  { %518 = vrot.lane.b32.xlu2 %v1400_v40, %s1544_s30 }
 0xc14   :  { %v719_v41 = vpop.f32.mrf.mxu2 }
 0xc15   :  { %v1737_v43 = vadd.f32 %v1734_v7, %v719_v41 }
 0xc17   :  { %v749_v44 = vadd.f32 %v746_v42, %v1737_v43 }
 0xc19   :  { %1401 = vtanh.f32 %v749_v44  ;;  %v1333_v54 = vmul.f32 -1.442695, %v749_v44 }
 0xc1a   :  { %1403 = vpow2.f32 %v1326_v45 }
 0xc1f   :  { %v1402_v10 = vpop.eup %1401 }
 0xc20   :  { %772 = vrot.lane.b32.xlu0 %v1402_v10, %s1544_s30  ;;  %v1404_v46 = vpop.eup %1403 }
 0xc21   :  { %v496_v47 = vadd.f32 1.0, %v1404_v46 }
 0xc23   :  { %1405 = vrcp.f32 %v496_v47  ;;  %v508_v53 = vand.u32 2147483648, %v496_v47  ;;  %vm502_vm12 = vweird.f32 %v496_v47  ;;  %v506_v55 = vand.u32 2147483647, %v496_v47 }
 0xc24   :  { %1407 = vpow2.f32 %v1333_v54 }
 0xc25   :  { %v509_v57 = vor.u32 1.1754944e-38, %v508_v53  ;;  %vm507_vm14 = vcmp.eq.f32.partialorder %v506_v55, 8.507059e+37 }
 0xc29   :  { %v1406_v48 = vpop.eup %1405 }
 0xc2a   :  { %v498_v49 = vmul.f32 %v1406_v48, %v496_v47  ;;  %vm503_vm5 = vweird.f32 %v1406_v48  ;;  %v1408_v63 = vpop.eup %1407 }
 0xc2b   :  { %vm504_vm13 = vmor %vm502_vm12, %vm503_vm5  ;;  %v753_v0 = vadd.f32 1.0, %v1408_v63 }
 0xc2c   :  { %v499_v50 = vsub.f32 1.0, %v498_v49 }
 0xc2d   :  { %1409 = vrcp.f32 %v753_v0  ;;  %v765_v6 = vand.u32 2147483648, %v753_v0  ;;  %vm759_vm1 = vweird.f32 %v753_v0  ;;  %v763_v9 = vand.u32 2147483647, %v753_v0 }
 0xc2e   :  { %v500_v51 = vmul.f32 %v1406_v48, %v499_v50 }
 0xc2f   :  { %v766_v8 = vor.u32 1.1754944e-38, %v765_v6  ;;  %vm764_vm3 = vcmp.eq.f32.partialorder %v763_v9, 8.507059e+37 }
 0xc30   :  { %v501_v52 = vadd.f32 %v1406_v48, %v500_v51 }
 0xc32   :  { %v505_v56 = vsel %vm504_vm13, %v1406_v48, %v501_v52 }
 0xc33   :  { %v510_v59 = vsel %vm507_vm14, %v509_v57, %v505_v56  ;;  %v1410_v1 = vpop.eup %1409 }
 0xc34   :  { %v755_v2 = vmul.f32 %v1410_v1, %v753_v0  ;;  %vm760_vm15 = vweird.f32 %v1410_v1  ;;  %v516_v16 = vmul.f32 %v514_v15, %v510_v59 }
 0xc35   :  { %vm761_vm2 = vmor %vm759_vm1, %vm760_vm15 }
 0xc36   :  { %v756_v3 = vsub.f32 1.0, %v755_v2 }
 0xc38   :  { %v757_v4 = vmul.f32 %v1410_v1, %v756_v3 }
 0xc3a   :  { %v758_v5 = vadd.f32 %v1410_v1, %v757_v4 }
 0xc3c   :  { %v762_v11 = vsel %vm761_vm2, %v1410_v1, %v758_v5 }
 0xc3d   :  { %v767_v13 = vsel %vm764_vm3, %v766_v8, %v762_v11 }
 0xc3e   :  { %v770_v20 = vmul.f32 0.0, %v767_v13 }
 0xc6a   :  { %v519_v58 = vpop.permute.xlu2 %518 }
 0xc6b   :  { %v521_v62 = vmul.f32 %v519_v58, %v510_v59 }
 0xc6d   :  { %523 = vrot.lane.b32.xlu1 %v521_v62, %s1545_s3 }
 0xc92   :  { %v773_v12 = vpop.permute.xlu0 %772 }
 0xc93   :  { %v775_v14 = vmul.f32 %v773_v12, %v767_v13 }
 0xc95   :  { %777 = vrot.lane.b32.xlu2 %v775_v14, %s1545_s3 }
 0xcdf   :  { %v524_v17 = vpop.permute.xlu1 %523 }
 0xce0   :  { %v1744_v18 = vadd.f32 %v524_v17, %v516_v16 }
 0xce2   :  { %1411 = vtanh.f32 %v1744_v18  ;;  %v588_v12 = vrot.slane %v1744_v18, 6 }
 0xce8   :  { %v1412_v19 = vpop.eup %1411 }
 0xce9   :  { %529 = vrot.lane.b32.xlu0 %v1412_v19, %s1544_s30 }
 0xcef   :  { %v778_v22 = vpop.permute.xlu2 %777 }
 0xcf0   :  { %v1748_v23 = vadd.f32 %v778_v22, %v770_v20 }
 0xcf2   :  { %1413 = vtanh.f32 %v1748_v23  ;;  %v837_v17 = vrot.slane %v1748_v23, 6 }
 0xcf8   :  { %v1414_v24 = vpop.eup %1413 }
 0xcf9   :  { %783 = vrot.lane.b32.xlu1 %v1414_v24, %s1544_s30 }
 0xd5b   :  { %v530_v25 = vpop.permute.xlu0 %529 }
 0xd5c   :  { %v1752_v21 = vmul.f32 %v530_v25, %v510_v59 }
 0xd5e   :  { %v538_v61 = vrot.slane %v1752_v21, 2 }
 0xd60   :  { %539 = vrot.lane.b32.xlu2 %v538_v61, %s1545_s3 }
 0xd6b   :  { %v784_v26 = vpop.permute.xlu1 %783 }
 0xd6c   :  { %v786_v27 = vmul.f32 %v784_v26, %v767_v13 }
 0xd6e   :  { %788 = vrot.lane.b32.xlu0 %v786_v27, %s1545_s3 }
 0xdba   :  { %v540_v30 = vpop.permute.xlu2 %539 }
 0xdbb   :  { %1327 = vmatmul.msk.f32.vlgmr.msrb.gmra.mxu0 %vm106_vm6, %v540_v30 }
 0xdbc   :  { %1014 = vmatpush.msrb.mxu0 %v1686_v29 }
 0xdbe   :  { %1015 = vmatpush.msrb.mxu0 %v1689_v28 }
 0xdc0   :  { %1016 = vmatpush.msrb.mxu0 %v1694_v31 }
 0xdc2   :  { %1017 = vmatpush.msrb.mxu0 %v1707_v33 }
 0xde0   :  { %v789_v32 = vpop.permute.xlu0 %788 }
 0xde1   :  { %1334 = vmatmul.msk.f32.vlgmr.msra.gmra.mxu0 %vm106_vm6, %v789_v32 }
 0xe38   :  { %v560_v34 = vpop.f32.mrf.mxu0 }
 0xe39   :  { %v564_v35 = vrot.slane %v560_v34, 4 }
 0xe3b   :  { %v566_v36 = vadd.f32 %v564_v35, %v1663_v60 }
 0xe3d   :  { %1415 = vtanh.f32 %v566_v36  ;;  %v1328_v42 = vmul.f32 -1.442695, %v566_v36 }
 0xe43   :  { %v1416_v37 = vpop.eup %1415 }
 0xe44   :  { %592 = vrot.lane.b32.xlu1 %v1416_v37, %s1544_s30 }
 0xe5e   :  { %v809_v38 = vpop.f32.mrf.mxu0 }
 0xe5f   :  { %v813_v39 = vrot.slane %v809_v38, 6 }
 0xe61   :  { %v815_v40 = vadd.f32 %v813_v39, %v1737_v43 }
 0xe63   :  { %1417 = vtanh.f32 %v815_v40  ;;  %v1335_v45 = vmul.f32 -1.442695, %v815_v40 }
 0xe64   :  { %1419 = vpow2.f32 %v1328_v42 }
 0xe69   :  { %v1418_v41 = vpop.eup %1417 }
 0xe6a   :  { %841 = vrot.lane.b32.xlu2 %v1418_v41, %s1544_s30  ;;  %v1420_v44 = vpop.eup %1419 }
 0xe6b   :  { %v570_v10 = vadd.f32 1.0, %v1420_v44 }
 0xe6d   :  { %1421 = vrcp.f32 %v570_v10  ;;  %v582_v54 = vand.u32 2147483648, %v570_v10  ;;  %vm576_vm4 = vweird.f32 %v570_v10  ;;  %v580_v55 = vand.u32 2147483647, %v570_v10 }
 0xe6e   :  { %1423 = vpow2.f32 %v1335_v45 }
 0xe6f   :  { %v583_v58 = vor.u32 1.1754944e-38, %v582_v54  ;;  %vm581_vm8 = vcmp.eq.f32.partialorder %v580_v55, 8.507059e+37 }
 0xe73   :  { %v1422_v46 = vpop.eup %1421 }
 0xe74   :  { %v1424_v47 = vpop.eup %1423  ;;  %v572_v48 = vmul.f32 %v1422_v46, %v570_v10  ;;  %vm577_vm0 = vweird.f32 %v1422_v46 }
 0xe75   :  { %v819_v49 = vadd.f32 1.0, %v1424_v47  ;;  %vm578_vm7 = vmor %vm576_vm4, %vm577_vm0 }
 0xe76   :  { %v573_v50 = vsub.f32 1.0, %v572_v48 }
 0xe77   :  { %1425 = vrcp.f32 %v819_v49  ;;  %v831_v3 = vand.u32 2147483648, %v819_v49  ;;  %vm825_vm12 = vweird.f32 %v819_v49  ;;  %v829_v4 = vand.u32 2147483647, %v819_v49 }
 0xe78   :  { %v574_v51 = vmul.f32 %v1422_v46, %v573_v50 }
 0xe79   :  { %v832_v6 = vor.u32 1.1754944e-38, %v831_v3  ;;  %vm830_vm14 = vcmp.eq.f32.partialorder %v829_v4, 8.507059e+37 }
 0xe7a   :  { %v575_v53 = vadd.f32 %v1422_v46, %v574_v51 }
 0xe7c   :  { %v579_v57 = vsel %vm578_vm7, %v1422_v46, %v575_v53 }
 0xe7d   :  { %v1426_v52 = vpop.eup %1425  ;;  %v584_v62 = vsel %vm581_vm8, %v583_v58, %v579_v57 }
 0xe7e   :  { %v821_v56 = vmul.f32 %v1426_v52, %v819_v49  ;;  %vm826_vm5 = vweird.f32 %v1426_v52  ;;  %v590_v13 = vmul.f32 %v588_v12, %v584_v62 }
 0xe7f   :  { %vm827_vm13 = vmor %vm825_vm12, %vm826_vm5 }
 0xe80   :  { %v822_v59 = vsub.f32 1.0, %v821_v56 }
 0xe82   :  { %v823_v1 = vmul.f32 %v1426_v52, %v822_v59 }
 0xe84   :  { %v824_v2 = vadd.f32 %v1426_v52, %v823_v1 }
 0xe86   :  { %v828_v5 = vsel %vm827_vm13, %v1426_v52, %v824_v2 }
 0xe87   :  { %v833_v11 = vsel %vm830_vm14, %v832_v6, %v828_v5 }
 0xe88   :  { %v839_v19 = vmul.f32 %v837_v17, %v833_v11 }
 0xeb6   :  { %v593_v63 = vpop.permute.xlu1 %592 }
 0xeb7   :  { %v595_v0 = vmul.f32 %v593_v63, %v584_v62 }
 0xeb9   :  { %597 = vrot.lane.b32.xlu0 %v595_v0, %s1545_s3 }
 0xec4   :  { %v842_v9 = vpop.permute.xlu2 %841 }
 0xec5   :  { %v844_v8 = vmul.f32 %v842_v9, %v833_v11 }
 0xec7   :  { %846 = vrot.lane.b32.xlu1 %v844_v8, %s1545_s3 }
 0xf2b   :  { %v598_v14 = vpop.permute.xlu0 %597 }
 0xf2c   :  { %v1770_v15 = vadd.f32 %v598_v14, %v590_v13 }
 0xf2e   :  { %1427 = vtanh.f32 %v1770_v15 }
 0xf34   :  { %v1428_v16 = vpop.eup %1427 }
 0xf35   :  { %603 = vrot.lane.b32.xlu2 %v1428_v16, %s1544_s30 }
 0xf39   :  { %v847_v20 = vpop.permute.xlu1 %846 }
 0xf3a   :  { %v849_v22 = vadd.f32 %v847_v20, %v839_v19 }
 0xf3c   :  { %1429 = vtanh.f32 %v849_v22  ;;  %v907_v53 = vrot.slane %v849_v22, 6  ;;  %v662_v22 = vrot.slane %v1770_v15, 6 }
 0xf42   :  { %v1430_v24 = vpop.eup %1429 }
 0xf43   :  { %852 = vrot.lane.b32.xlu0 %v1430_v24, %s1544_s30 }
 0xf8f   :  { %v604_v25 = vpop.permute.xlu2 %603 }
 0xf90   :  { %v1776_v18 = vmul.f32 %v604_v25, %v584_v62 }
 0xf92   :  { %v612_v61 = vrot.slane %v1776_v18, 4 }
 0xf94   :  { %613 = vrot.lane.b32.xlu1 %v612_v61, %s1545_s3 }
 0xfb5   :  { %v853_v26 = vpop.permute.xlu0 %852 }
 0xfb6   :  { %v855_v27 = vmul.f32 %v853_v26, %v833_v11 }
 0xfb8   :  { %v857_v30 = vrot.slane %v855_v27, 2 }
 0xfba   :  { %858 = vrot.lane.b32.xlu2 %v857_v30, %s1545_s3 }
0x1006   :  { %v614_v23 = vpop.permute.xlu1 %613 }
0x1007   :  { %1329 = vmatmul.msk.f32.vlgmr.msra.gmra.mxu1 %vm106_vm6, %v614_v23 }
0x1008   :  { %1080 = vmatpush.msra.mxu1 %v1686_v29 }
0x100a   :  { %1081 = vmatpush.msra.mxu1 %v1689_v28 }
0x100c   :  { %1082 = vmatpush.msra.mxu1 %v1694_v31 }
0x100e   :  { %1083 = vmatpush.msra.mxu1 %v1707_v33 }
0x1014   :  { %v859_v32 = vpop.permute.xlu2 %858 }
0x1015   :  { %1336 = vmatmul.msk.f32.vlgmr.msrb.gmra.mxu1 %vm106_vm6, %v859_v32 }
0x1084   :  { %v634_v34 = vpop.f32.mrf.mxu1 }
0x1085   :  { %v638_v45 = vrot.slane %v634_v34, 2 }
0x1087   :  { %v640_v48 = vadd.f32 %v638_v45, %v1663_v60 }
0x1089   :  { %v1330_v60 = vmul.f32 -1.442695, %v640_v48 }
0x1092   :  { %v879_v35 = vpop.f32.mrf.mxu1 }
0x1093   :  { %v883_v36 = vrot.slane %v879_v35, 4 }
0x1095   :  { %v885_v37 = vadd.f32 %v883_v36, %v1737_v43 }
0x1097   :  { %1431 = vtanh.f32 %v885_v37  ;;  %v1337_v39 = vmul.f32 -1.442695, %v885_v37 }
0x1099   :  { %1433 = vpow2.f32 %v1337_v39 }
0x109d   :  { %v1432_v38 = vpop.eup %1431 }
0x109e   :  { %911 = vrot.lane.b32.xlu0 %v1432_v38, %s1544_s30 }
0x109f   :  { %v1434_v29 = vpop.eup %1433 }
0x10a0   :  { %v889_v28 = vadd.f32 1.0, %v1434_v29 }
0x10a2   :  { %1435 = vrcp.f32 %v889_v28  ;;  %v901_v44 = vand.u32 2147483648, %v889_v28  ;;  %vm895_vm1 = vweird.f32 %v889_v28  ;;  %v899_v10 = vand.u32 2147483647, %v889_v28 }
0x10a3   :  { %1437 = vtanh.f32 %v640_v48 }
0x10a4   :  { %v902_v47 = vor.u32 1.1754944e-38, %v901_v44  ;;  %vm900_vm3 = vcmp.eq.f32.partialorder %v899_v10, 8.507059e+37 }
0x10a8   :  { %v1436_v31 = vpop.eup %1435 }
0x10a9   :  { %v891_v40 = vmul.f32 %v1436_v31, %v889_v28  ;;  %vm896_vm15 = vweird.f32 %v1436_v31  ;;  %v1438_v52 = vpop.eup %1437 }
0x10aa   :  { %vm897_vm2 = vmor %vm895_vm1, %vm896_vm15 }
0x10ab   :  { %v892_v33 = vsub.f32 1.0, %v891_v40 }
0x10ad   :  { %v893_v41 = vmul.f32 %v1436_v31, %v892_v33 }
0x10af   :  { %v894_v42 = vadd.f32 %v1436_v31, %v893_v41 }
0x10b1   :  { %v898_v46 = vsel %vm897_vm2, %v1436_v31, %v894_v42 }
0x10b2   :  { %v903_v50 = vsel %vm900_vm3, %v902_v47, %v898_v46 }
0x10b3   :  { %v909_v54 = vmul.f32 %v907_v53, %v903_v50 }
0x1110   :  { %v912_v49 = vpop.permute.xlu0 %911 }
0x1111   :  { %v914_v51 = vmul.f32 %v912_v49, %v903_v50 }
0x1113   :  { %916 = vrot.lane.b32.xlu1 %v914_v51, %s1545_s3 }
0x111b   :  { %666 = vrot.lane.b32.xlu1 %v1438_v52, %s1544_s30 }
0x1185   :  { %v917_v55 = vpop.permute.xlu1 %916 }
0x1186   :  { %v1792_v56 = vadd.f32 %v917_v55, %v909_v54 }
0x1188   :  { %1439 = vtanh.f32 %v1792_v56  ;;  %v977_v41 = vrot.slane %v1792_v56, 6 }
0x1189   :  { %1441 = vpow2.f32 %v1330_v60 }
0x118d   :  { %v667_v8 = vpop.permute.xlu1 %666 }
0x118e   :  { %v1440_v57 = vpop.eup %1439 }
0x118f   :  { %922 = vrot.lane.b32.xlu2 %v1440_v57, %s1544_s30  ;;  %v1442_v58 = vpop.eup %1441 }
0x1190   :  { %v644_v59 = vadd.f32 1.0, %v1442_v58 }
0x1192   :  { %1443 = vrcp.f32 %v644_v59  ;;  %v656_v6 = vand.u32 2147483648, %v644_v59  ;;  %vm650_vm4 = vweird.f32 %v644_v59  ;;  %v654_v9 = vand.u32 2147483647, %v644_v59 }
0x1194   :  { %v657_v12 = vor.u32 1.1754944e-38, %v656_v6  ;;  %vm655_vm8 = vcmp.eq.f32.partialorder %v654_v9, 8.507059e+37 }
0x1198   :  { %v1444_v62 = vpop.eup %1443 }
0x1199   :  { %v646_v63 = vmul.f32 %v1444_v62, %v644_v59  ;;  %vm651_vm0 = vweird.f32 %v1444_v62 }
0x119a   :  { %vm652_vm7 = vmor %vm650_vm4, %vm651_vm0 }
0x119b   :  { %v647_v0 = vsub.f32 1.0, %v646_v63 }
0x119d   :  { %v648_v1 = vmul.f32 %v1444_v62, %v647_v0 }
0x119f   :  { %v649_v4 = vadd.f32 %v1444_v62, %v648_v1 }
0x11a1   :  { %v653_v11 = vsel %vm652_vm7, %v1444_v62, %v649_v4 }
0x11a2   :  { %v658_v13 = vsel %vm655_vm8, %v657_v12, %v653_v11 }
0x11a3   :  { %v669_v14 = vmul.f32 %v667_v8, %v658_v13  ;;  %v664_v25 = vmul.f32 %v662_v22, %v658_v13 }
0x11e9   :  { %v923_v2 = vpop.permute.xlu2 %922 }
0x11ea   :  { %v925_v3 = vmul.f32 %v923_v2, %v903_v50 }
0x11ec   :  { %v927_v5 = vrot.slane %v925_v3, 4 }
0x11ee   :  { %928 = vrot.lane.b32.xlu0 %v927_v5, %s1545_s3 }
0x11f6   :  { %671 = vrot.lane.b32.xlu0 %v669_v14, %s1545_s3 }
0x1260   :  { %v929_v16 = vpop.permute.xlu0 %928 }
0x1261   :  { %1338 = vmatmul.msk.f32.vlgmr.msrb.gmra.mxu3 %vm106_vm6, %v929_v16 }
0x1268   :  { %v672_v24 = vpop.permute.xlu0 %671 }
0x1269   :  { %v674_v61 = vadd.f32 %v672_v24, %v664_v25 }
0x12e4   :  { %v949_v17 = vpop.f32.mrf.mxu3 }
0x12e5   :  { %v953_v19 = vrot.slane %v949_v17, 2 }
0x12e7   :  { %v955_v20 = vadd.f32 %v953_v19, %v1737_v43 }
0x12e9   :  { %1445 = vtanh.f32 %v955_v20  ;;  %v1339_v30 = vmul.f32 -1.442695, %v955_v20 }
0x12ea   :  { %1447 = vtanh.f32 %v674_v61 }
0x12eb   :  { %1449 = vpow2.f32 %v1339_v30 }
0x12ef   :  { %v1446_v26 = vpop.eup %1445 }
0x12f0   :  { %981 = vrot.lane.b32.xlu2 %v1446_v26, %s1544_s30  ;;  %v1448_v27 = vpop.eup %1447 }
0x12f1   :  { %v1450_v23 = vpop.eup %1449 }
0x12f2   :  { %v959_v43 = vadd.f32 1.0, %v1450_v23 }
0x12f4   :  { %1451 = vrcp.f32 %v959_v43  ;;  %v971_v37 = vand.u32 2147483648, %v959_v43  ;;  %vm965_vm12 = vweird.f32 %v959_v43  ;;  %v969_v38 = vand.u32 2147483647, %v959_v43 }
0x12f6   :  { %v972_v29 = vor.u32 1.1754944e-38, %v971_v37  ;;  %vm970_vm14 = vcmp.eq.f32.partialorder %v969_v38, 8.507059e+37 }
0x12f8   :  { %677 = vrot.lane.b32.xlu2 %v1448_v27, %s1544_s30 }
0x12fa   :  { %v1452_v15 = vpop.eup %1451 }
0x12fb   :  { %v961_v32 = vmul.f32 %v1452_v15, %v959_v43  ;;  %vm966_vm5 = vweird.f32 %v1452_v15 }
0x12fc   :  { %vm967_vm13 = vmor %vm965_vm12, %vm966_vm5 }
0x12fd   :  { %v962_v34 = vsub.f32 1.0, %v961_v32 }
0x12ff   :  { %v963_v35 = vmul.f32 %v1452_v15, %v962_v34 }
0x1300   :  { %608 = vrot.lane.b32.xlu2 %v1776_v18, %s1545_s3 }
0x1301   :  { %v964_v36 = vadd.f32 %v1452_v15, %v963_v35 }
0x1303   :  { %v968_v39 = vsel %vm967_vm13, %v1452_v15, %v964_v36 }
0x1304   :  { %v973_v18 = vsel %vm970_vm14, %v972_v29, %v968_v39 }
0x1305   :  { %v979_v42 = vmul.f32 %v977_v41, %v973_v18 }
0x134a   :  { %v982_v28 = vpop.permute.xlu2 %981 }
0x134b   :  { %v984_v31 = vmul.f32 %v982_v28, %v973_v18 }
0x134d   :  { %986 = vrot.lane.b32.xlu1 %v984_v31, %s1545_s3 }
0x1352   :  { %v678_v40 = vpop.permute.xlu2 %677 }
0x1353   :  { %v680_v47 = vmul.f32 %v678_v40, %v658_v13 }
0x1355   :  { %534 = vrot.lane.b32.xlu1 %v1752_v21, %s1545_s3 }
0x135a   :  { %v609_v33 = vpop.permute.xlu2 %608 }
0x135b   :  { %611 = vst.msk [vmem:[#allocation2 + $0x8] sm:$0x30] %vm319_vm10, %v609_v33 }
0x13bf   :  { %v987_v44 = vpop.permute.xlu1 %986 }
0x13c0   :  { %v989_v10 = vadd.f32 %v987_v44, %v979_v42 }
0x13c2   :  { %1453 = vtanh.f32 %v989_v10  ;;  %v1044_v8 = vrot.slane %v989_v10, 6 }
0x13c7   :  { %v535_v45 = vpop.permute.xlu1 %534 }
0x13c8   :  { %v1454_v46 = vpop.eup %1453  ;;  %537 = vst.msk [vmem:[#allocation2 + $0x8] sm:$0xc] %vm244_vm9, %v535_v45 }
0x13c9   :  { %992 = vrot.lane.b32.xlu0 %v1454_v46, %s1544_s30 }
0x13d1   :  { %682 = vrot.lane.b32.xlu0 %v680_v47, %s1545_s3 }
0x143b   :  { %v993_v48 = vpop.permute.xlu0 %992 }
0x143c   :  { %v995_v21 = vmul.f32 %v993_v48, %v973_v18 }
0x143e   :  { %v997_v49 = vrot.slane %v995_v21, 6 }
0x1440   :  { %998 = vrot.lane.b32.xlu1 %v997_v49, %s1545_s3 }
0x1443   :  { %v683_v50 = vpop.permute.xlu0 %682 }
0x1444   :  { %685 = vst.msk [vmem:[#allocation2 + $0x8] sm:$0xc0] %vm394_vm11, %v683_v50 }
0x144b   :  { %v687_v51 = vld [vmem:[#allocation2 + $0x8] sm:$0xff] }
0x144c   :  { %1332 = vmatmul.msk.f32.gmra.mxu2 %vm106_vm6, %v687_v51 }
0x14b2   :  { %v999_v52 = vpop.permute.xlu1 %998 }
0x14b3   :  { %1340 = vmatmul.msk.f32.vlgmr.msrb.gmra.mxu0 %vm106_vm6, %v999_v52 }
0x14cf   :  { %v722_v53 = vpop.f32.mrf.mxu2 }
0x14d0   :  { %v1818_v54 = vadd.f32 %v1734_v7, %v722_v53 }
0x1530   :  { %v1019_v55 = vpop.f32.mrf.mxu0 }
0x1531   :  { %v1022_v56 = vadd.f32 %v1019_v55, %v1818_v54 }
0x1533   :  { %1455 = vtanh.f32 %v1022_v56  ;;  %v1341_v60 = vmul.f32 -1.442695, %v1022_v56 }
0x1535   :  { %1457 = vpow2.f32 %v1341_v60 }
0x1539   :  { %v1456_v57 = vpop.eup %1455 }
0x153a   :  { %1048 = vrot.lane.b32.xlu2 %v1456_v57, %s1544_s30 }
0x153b   :  { %v1458_v58 = vpop.eup %1457 }
0x153c   :  { %v1026_v59 = vadd.f32 1.0, %v1458_v58 }
0x153e   :  { %1459 = vrcp.f32 %v1026_v59  ;;  %v1038_v7 = vand.u32 2147483648, %v1026_v59  ;;  %vm1032_vm10 = vweird.f32 %v1026_v59  ;;  %v1036_v3 = vand.u32 2147483647, %v1026_v59 }
0x1540   :  { %v1039_v5 = vor.u32 1.1754944e-38, %v1038_v7  ;;  %vm1037_vm15 = vcmp.eq.f32.partialorder %v1036_v3, 8.507059e+37 }
0x1544   :  { %v1460_v62 = vpop.eup %1459 }
0x1545   :  { %v1028_v63 = vmul.f32 %v1460_v62, %v1026_v59  ;;  %vm1033_vm9 = vweird.f32 %v1460_v62 }
0x1546   :  { %vm1034_vm11 = vmor %vm1032_vm10, %vm1033_vm9  ;;  %vm1306_vm10 = vcmask 9216  }
0x1547   :  { %v1029_v0 = vsub.f32 1.0, %v1028_v63 }
0x1549   :  { %v1030_v1 = vmul.f32 %v1460_v62, %v1029_v0 }
0x154b   :  { %v1031_v2 = vadd.f32 %v1460_v62, %v1030_v1 }
0x154d   :  { %v1035_v4 = vsel %vm1034_vm11, %v1460_v62, %v1031_v2 }
0x154e   :  { %v1040_v9 = vsel %vm1037_vm15, %v1039_v5, %v1035_v4 }
0x154f   :  { %v1046_v12 = vmul.f32 %v1044_v8, %v1040_v9 }
0x1594   :  { %v1049_v6 = vpop.permute.xlu2 %1048 }
0x1595   :  { %v1051_v11 = vmul.f32 %v1049_v6, %v1040_v9 }
0x1597   :  { %1053 = vrot.lane.b32.xlu0 %v1051_v11, %s1545_s3 }
0x1609   :  { %v1054_v13 = vpop.permute.xlu0 %1053 }
0x160a   :  { %v1056_v14 = vadd.f32 %v1054_v13, %v1046_v12 }
0x160c   :  { %1461 = vtanh.f32 %v1056_v14  ;;  %v1113_v18 = vrot.slane %v1056_v14, 6 }
0x1612   :  { %v1462_v16 = vpop.eup %1461 }
0x1613   :  { %1059 = vrot.lane.b32.xlu1 %v1462_v16, %s1544_s30 }
0x1685   :  { %v1060_v17 = vpop.permute.xlu1 %1059 }
0x1686   :  { %v1062_v19 = vmul.f32 %v1060_v17, %v1040_v9 }
0x1688   :  { %1064 = vrot.lane.b32.xlu2 %v1062_v19, %s1545_s3 }
0x16e2   :  { %v1065_v20 = vpop.permute.xlu2 %1064 }
0x16e3   :  { %1342 = vmatmul.msk.f32.vlgmr.msra.gmra.mxu1 %vm106_vm6, %v1065_v20 }
0x1760   :  { %v1085_v22 = vpop.f32.mrf.mxu1 }
0x1761   :  { %v1089_v24 = vrot.slane %v1085_v22, 6 }
0x1763   :  { %v1091_v25 = vadd.f32 %v1089_v24, %v1818_v54 }
0x1765   :  { %1463 = vtanh.f32 %v1091_v25  ;;  %v1343_v26 = vmul.f32 -1.442695, %v1091_v25 }
0x1767   :  { %1465 = vpow2.f32 %v1343_v26 }
0x176b   :  { %v1464_v61 = vpop.eup %1463 }
0x176c   :  { %1117 = vrot.lane.b32.xlu0 %v1464_v61, %s1544_s30 }
0x176d   :  { %v1466_v27 = vpop.eup %1465 }
0x176e   :  { %v1095_v30 = vadd.f32 1.0, %v1466_v27 }
0x1770   :  { %1467 = vrcp.f32 %v1095_v30  ;;  %v1107_v35 = vand.u32 2147483648, %v1095_v30  ;;  %vm1101_vm2 = vweird.f32 %v1095_v30  ;;  %v1105_v36 = vand.u32 2147483647, %v1095_v30 }
0x1772   :  { %v1108_v38 = vor.u32 1.1754944e-38, %v1107_v35  ;;  %vm1106_vm0 = vcmp.eq.f32.partialorder %v1105_v36, 8.507059e+37 }
0x1776   :  { %v1468_v23 = vpop.eup %1467 }
0x1777   :  { %v1097_v43 = vmul.f32 %v1468_v23, %v1095_v30  ;;  %vm1102_vm1 = vweird.f32 %v1468_v23 }
0x1778   :  { %vm1103_vm3 = vmor %vm1101_vm2, %vm1102_vm1 }
0x1779   :  { %v1098_v15 = vsub.f32 1.0, %v1097_v43 }
0x177b   :  { %v1099_v32 = vmul.f32 %v1468_v23, %v1098_v15 }
0x177d   :  { %v1100_v34 = vadd.f32 %v1468_v23, %v1099_v32 }
0x177f   :  { %v1104_v37 = vsel %vm1103_vm3, %v1468_v23, %v1100_v34 }
0x1780   :  { %v1109_v29 = vsel %vm1106_vm0, %v1108_v38, %v1104_v37 }
0x1781   :  { %v1115_v31 = vmul.f32 %v1113_v18, %v1109_v29  ;;  %v1272_v18 = vld [vmem:[%s1869_s7] sm:$0xff] }
0x17de   :  { %v1118_v39 = vpop.permute.xlu0 %1117 }
0x17df   :  { %v1120_v28 = vmul.f32 %v1118_v39, %v1109_v29  ;;  %v1275_v39 = vld [vmem:[%s1869_s7 + $0x18] sm:$0xff] }
0x17e0   :  { %1298 = vmatpush.msra.mxu0 %v1275_v39 }
0x17e1   :  { %1122 = vrot.lane.b32.xlu1 %v1120_v28, %s1545_s3  ;;  %v1273_v28 = vld [vmem:[%s1869_s7 + $0x8] sm:$0xff] }
0x1853   :  { %v1123_v40 = vpop.permute.xlu1 %1122 }
0x1854   :  { %v1125_v33 = vadd.f32 %v1123_v40, %v1115_v31 }
0x1856   :  { %1469 = vtanh.f32 %v1125_v33  ;;  %v1183_v2 = vrot.slane %v1125_v33, 6 }
0x185c   :  { %v1470_v41 = vpop.eup %1469 }
0x185d   :  { %1128 = vrot.lane.b32.xlu2 %v1470_v41, %s1544_s30 }
0x18b7   :  { %v1129_v42 = vpop.permute.xlu2 %1128 }
0x18b8   :  { %v1131_v44 = vmul.f32 %v1129_v42, %v1109_v29  ;;  %v1274_v29 = vld [vmem:[%s1869_s7 + $0x10] sm:$0xff]  ;;  %v1358_v42 = vld [vmem:[%s1870_s8] ss:$0 sm:$0xff] }
0x18b9   :  { %1299 = vmatpush.msra.mxu0 %v1274_v29 }
0x18ba   :  { %v1133_v10 = vrot.slane %v1131_v44, 2 }
0x18bb   :  { %1300 = vmatpush.msra.mxu0 %v1273_v28 }
0x18bc   :  { %1134 = vrot.lane.b32.xlu0 %v1133_v10, %s1545_s3 }
0x18bd   :  { %1301 = vmatpush.msra.mxu0 %v1272_v18 }
0x192e   :  { %v1135_v45 = vpop.permute.xlu0 %1134 }
0x192f   :  { %1344 = vmatmul.msk.f32.vlgmr.msrb.gmra.mxu2 %vm106_vm6, %v1135_v45 }
0x19b2   :  { %v1155_v46 = vpop.f32.mrf.mxu2 }
0x19b3   :  { %v1159_v47 = vrot.slane %v1155_v46, 4 }
0x19b5   :  { %v1161_v48 = vadd.f32 %v1159_v47, %v1818_v54 }
0x19b7   :  { %1471 = vtanh.f32 %v1161_v48  ;;  %v1345_v49 = vmul.f32 -1.442695, %v1161_v48 }
0x19b9   :  { %1473 = vpow2.f32 %v1345_v49 }
0x19bd   :  { %v1472_v21 = vpop.eup %1471 }
0x19be   :  { %1187 = vrot.lane.b32.xlu1 %v1472_v21, %s1544_s30 }
0x19bf   :  { %v1474_v50 = vpop.eup %1473 }
0x19c0   :  { %v1165_v51 = vadd.f32 1.0, %v1474_v50 }
0x19c2   :  { %1475 = vrcp.f32 %v1165_v51  ;;  %v1177_v60 = vand.u32 2147483648, %v1165_v51  ;;  %vm1171_vm7 = vweird.f32 %v1165_v51  ;;  %v1175_v58 = vand.u32 2147483647, %v1165_v51 }
0x19c4   :  { %v1178_v62 = vor.u32 1.1754944e-38, %v1177_v60  ;;  %vm1176_vm5 = vcmp.eq.f32.partialorder %v1175_v58, 8.507059e+37 }
0x19c8   :  { %v1476_v52 = vpop.eup %1475 }
0x19c9   :  { %v1167_v53 = vmul.f32 %v1476_v52, %v1165_v51  ;;  %vm1172_vm4 = vweird.f32 %v1476_v52 }
0x19ca   :  { %vm1173_vm8 = vmor %vm1171_vm7, %vm1172_vm4 }
0x19cb   :  { %v1168_v55 = vsub.f32 1.0, %v1167_v53 }
0x19cd   :  { %v1169_v56 = vmul.f32 %v1476_v52, %v1168_v55 }
0x19cf   :  { %v1170_v57 = vadd.f32 %v1476_v52, %v1169_v56 }
0x19d1   :  { %v1174_v59 = vsel %vm1173_vm8, %v1476_v52, %v1170_v57 }
0x19d2   :  { %v1179_v0 = vsel %vm1176_vm5, %v1178_v62, %v1174_v59 }
0x19d3   :  { %v1185_v7 = vmul.f32 %v1183_v2, %v1179_v0 }
0x1a30   :  { %v1188_v63 = vpop.permute.xlu1 %1187 }
0x1a31   :  { %v1190_v1 = vmul.f32 %v1188_v63, %v1179_v0 }
0x1a33   :  { %1192 = vrot.lane.b32.xlu2 %v1190_v1, %s1545_s3 }
0x1a8d   :  { %v1193_v3 = vpop.permute.xlu2 %1192 }
0x1a8e   :  { %v1195_v4 = vadd.f32 %v1193_v3, %v1185_v7 }
0x1a90   :  { %1477 = vtanh.f32 %v1195_v4  ;;  %v1253_v34 = vrot.slane %v1195_v4, 6 }
0x1a96   :  { %v1478_v5 = vpop.eup %1477 }
0x1a97   :  { %1198 = vrot.lane.b32.xlu0 %v1478_v5, %s1544_s30 }
0x1b09   :  { %v1199_v6 = vpop.permute.xlu0 %1198 }
0x1b0a   :  { %v1201_v9 = vmul.f32 %v1199_v6, %v1179_v0 }
0x1b0c   :  { %v1203_v11 = vrot.slane %v1201_v9, 4 }
0x1b0e   :  { %1204 = vrot.lane.b32.xlu1 %v1203_v11, %s1545_s3 }
0x1b80   :  { %v1205_v8 = vpop.permute.xlu1 %1204 }
0x1b81   :  { %1346 = vmatmul.msk.f32.vlgmr.msra.gmra.mxu3 %vm106_vm6, %v1205_v8 }
0x1c04   :  { %v1225_v12 = vpop.f32.mrf.mxu3 }
0x1c05   :  { %v1229_v13 = vrot.slane %v1225_v12, 2 }
0x1c07   :  { %v1231_v14 = vadd.f32 %v1229_v13, %v1818_v54 }
0x1c09   :  { %1479 = vtanh.f32 %v1231_v14  ;;  %v1347_v17 = vmul.f32 -1.442695, %v1231_v14 }
0x1c0b   :  { %1481 = vpow2.f32 %v1347_v17 }
0x1c0f   :  { %v1480_v16 = vpop.eup %1479 }
0x1c10   :  { %1257 = vrot.lane.b32.xlu2 %v1480_v16, %s1544_s30 }
0x1c11   :  { %v1482_v19 = vpop.eup %1481 }
0x1c12   :  { %v1235_v20 = vadd.f32 1.0, %v1482_v19 }
0x1c14   :  { %1483 = vrcp.f32 %v1235_v20  ;;  %v1247_v27 = vand.u32 2147483648, %v1235_v20  ;;  %vm1241_vm13 = vweird.f32 %v1235_v20  ;;  %v1245_v30 = vand.u32 2147483647, %v1235_v20 }
0x1c16   :  { %v1248_v23 = vor.u32 1.1754944e-38, %v1247_v27  ;;  %vm1246_vm9 = vcmp.eq.f32.partialorder %v1245_v30, 8.507059e+37 }
0x1c1a   :  { %v1484_v22 = vpop.eup %1483 }
0x1c1b   :  { %v1237_v24 = vmul.f32 %v1484_v22, %v1235_v20  ;;  %vm1242_vm12 = vweird.f32 %v1484_v22 }
0x1c1c   :  { %vm1243_vm14 = vmor %vm1241_vm13, %vm1242_vm12 }
0x1c1d   :  { %v1238_v25 = vsub.f32 1.0, %v1237_v24 }
0x1c1f   :  { %v1239_v61 = vmul.f32 %v1484_v22, %v1238_v25 }
0x1c21   :  { %v1240_v26 = vadd.f32 %v1484_v22, %v1239_v61 }
0x1c23   :  { %v1244_v54 = vsel %vm1243_vm14, %v1484_v22, %v1240_v26 }
0x1c24   :  { %v1249_v15 = vsel %vm1246_vm9, %v1248_v23, %v1244_v54 }
0x1c25   :  { %v1255_v35 = vmul.f32 %v1253_v34, %v1249_v15 }
0x1c6a   :  { %v1258_v43 = vpop.permute.xlu2 %1257 }
0x1c6b   :  { %v1260_v32 = vmul.f32 %v1258_v43, %v1249_v15 }
0x1c6d   :  { %1262 = vrot.lane.b32.xlu0 %v1260_v32, %s1545_s3 }
0x1cdf   :  { %v1263_v36 = vpop.permute.xlu0 %1262 }
0x1ce0   :  { %v1265_v37 = vadd.f32 %v1263_v36, %v1255_v35 }
0x1ce2   :  { %1485 = vtanh.f32 %v1265_v37 }
0x1ce8   :  { %v1486_v38 = vpop.eup %1485 }
0x1ce9   :  { %1268 = vrot.lane.b32.xlu1 %v1486_v38, %s1544_s30 }
0x1d5b   :  { %v1269_v31 = vpop.permute.xlu1 %1268 }
0x1d5c   :  { %v1271_v40 = vmul.f32 %v1269_v31, %v1249_v15 }
0x1d5e   :  { %v1281_v33 = vrot.slane %v1271_v40, 6 }
0x1d60   :  { %1282 = vrot.lane.b32.xlu2 %v1281_v33, %s1545_s3 }
0x1dba   :  { %v1283_v41 = vpop.permute.xlu2 %1282 }
0x1dbb   :  { %1348 = vmatmul.msk.f32.vlgmr.msra.gmra.mxu0 %vm106_vm6, %v1283_v41 }
0x1e38   :  { %v1303_v44 = vpop.f32.mrf.mxu0 }
0x1e39   :  { %v1304_v10 = vadd.f32 %v1358_v42, %v1303_v44 }
0x1e3b   :  { %1307 = vst.msk [vmem:[%s1871_s9] sm:$0x3] %vm1306_vm10, %v1304_v10 }
0x1e3c   :  { %1312 = vsyncpa [#allocation4], 1 }
0x1e3d   :  { %1313 = vsyncpa [#allocation6], 1 }

</bundles_post_ra>
